<compile_context>
chip_gen: v7x
topology: tpu7x:2x2x1
jax: 0.10.0
libtpu: 0.0.40
codegen_flags: <defaults>
</compile_context>

<pallas_src>
import functools

import jax
import jax.numpy as jnp
import numpy as np
from jax.experimental import pallas as pl
from jax.experimental.pallas import tpu as pltpu

CLIP_SCALING = 0.2
XYZ_MAX_STEP = 1.2 / 32.0
INIT_SCALING = -5.0
INIT_DENSITY = 0.1

# fused output column layout: [shs(3) | scaling(3) | xyz(3) | opacity(1) | rot(4)]
SHS_SL = slice(0, 3)
SCALE_SL = slice(3, 6)
XYZ_SL = slice(6, 9)
OPA_SL = slice(9, 10)
ROT_SL = slice(10, 14)
ROT_START = 10
D_TOTAL = 14

GS_SLICES = {
    "shs": SHS_SL,
    "scaling": SCALE_SL,
    "offset_xyz": XYZ_SL,
    "opacity": OPA_SL,
    "rotation": ROT_SL,
}

VMEM_BUDGET = 48 << 20  # conservative: fits v7x's 64 MiB physical with headroom


def _round_up(x, m):
    return (x + m - 1) // m * m


def _per_row_vmem(C, x_bytes, out_bytes):
    # x double-buffer + output double-buffer (lane dim padded to 128)
    # + slack for a handful of lane-padded f32 elementwise intermediates.
    return 2 * C * x_bytes + 2 * 128 * out_bytes + 8 * 128 * 4


def _tile_rows(N, C, x_bytes, out_bytes, requested_tm):
    per_row = _per_row_vmem(C, x_bytes, out_bytes)
    tm_cap = max(16, (VMEM_BUDGET // per_row) // 16 * 16)
    tm = min(requested_tm, tm_cap, _round_up(N, 16))
    return max(16, _round_up(tm, 16))


def gslayer_kernel(x_ref, w_ref, b_ref, out_ref, *, cast_to):
    """One grid step: a [tm, C] row-tile of x -> one fused [tm, 14] output tile.

    All per-head activations run on the full vreg (no lane sub-slices) and are
    combined with a single column-mask select, so exactly one store stream is
    issued per tile.  The bf16 cast (if any) happens here, per-tile, so x is
    only ever read from HBM once at its native dtype.
    """
    x = x_ref[...]
    if cast_to is not None and x.dtype != jnp.dtype(cast_to):
        x = x.astype(cast_to)

    # Fused Linear heads: (tm, C) @ (C, 14) -> f32 accumulate, + f32 bias.
    y = jnp.dot(x, w_ref[...], preferred_element_type=jnp.float32) + b_ref[...]

    col = jax.lax.broadcasted_iota(jnp.int32, y.shape, 1)

    # Full-vreg EUP work (only the needed columns survive the select below).
    sig = jax.nn.sigmoid(y)                                  # shs / xyz / opacity
    expc = jnp.clip(jnp.exp(y), 0.0, CLIP_SCALING)           # scaling (trunc_exp+clamp)

    # rotation: F.normalize(eps=1e-12) over the 4 rotation columns.
    is_rot = col >= ROT_START
    r = jnp.where(is_rot, y, 0.0)
    ss = jnp.sum(r * r, axis=-1, keepdims=True)
    inv_norm = jax.lax.rsqrt(jnp.maximum(ss, 1e-24))         # == 1/max(norm, 1e-12)
    rot = y * inv_norm                                       # non-rot cols overridden below

    fused = jnp.where(
        col < 3, sig,                                        # shs (use_rgb sigmoid)
        jnp.where(col < 6, expc,                             # scaling
                  jnp.where(col < 9, (sig - 0.5) * XYZ_MAX_STEP,  # offset_xyz
                            jnp.where(col < 10, sig,         # opacity
                                      rot))))                # rotation
    out_ref[...] = fused.astype(out_ref.dtype)


@functools.partial(jax.jit, static_argnames=("tm", "compute_dtype", "out_dtype"))
def gslayer_forward_fused(x, pts, W, b, *, tm=4096,
                          compute_dtype=jnp.bfloat16,
                          out_dtype=jnp.float32):
    """x: [N, C], pts: [N, 3] (unused: xyz_offset=True never adds pts).

    Returns the fused [N, 14] attribute array (see GS_SLICES for the column
    layout).  This is the perf path: one kernel, one output array, no extra
    HBM passes.  Use split_gs_output / gslayer_forward for the module dict.
    """
    del pts
    N, C = x.shape
    assert W.shape == (C, D_TOTAL) and b.shape == (D_TOTAL,)

    x_bytes = x.dtype.itemsize
    out_bytes = jnp.dtype(out_dtype).itemsize
    w_bytes = jnp.dtype(compute_dtype).itemsize

    tm = _tile_rows(N, C, x_bytes, out_bytes, tm)
    grid = pl.cdiv(N, tm)

    per_row = _per_row_vmem(C, x_bytes, out_bytes)
    vmem_need = per_row * tm + 2 * C * 128 * w_bytes + (2 << 20)
    vmem_limit = int(min(max(vmem_need, 16 << 20), 56 << 20))

    Wc = W.astype(compute_dtype)             # tiny (C, 14): negligible one-off cast
    b2 = b.reshape(1, D_TOTAL).astype(jnp.float32)

    cost = pl.CostEstimate(
        flops=2 * N * C * D_TOTAL,
        transcendentals=2 * N * D_TOTAL,
        bytes_accessed=N * C * x_bytes + C * D_TOTAL * w_bytes
                       + N * D_TOTAL * out_bytes,
    )

    return pl.pallas_call(
        functools.partial(gslayer_kernel, cast_to=compute_dtype),
        out_shape=jax.ShapeDtypeStruct((N, D_TOTAL), out_dtype),
        grid_spec=pltpu.PrefetchScalarGridSpec(
            num_scalar_prefetch=0,
            grid=(grid,),
            in_specs=[
                pl.BlockSpec((tm, C), lambda i: (i, 0)),         # row tile of x
                pl.BlockSpec((C, D_TOTAL), lambda i: (0, 0)),    # resident W
                pl.BlockSpec((1, D_TOTAL), lambda i: (0, 0)),    # resident bias
            ],
            out_specs=pl.BlockSpec((tm, D_TOTAL), lambda i: (i, 0)),
        ),
        compiler_params=pltpu.CompilerParams(
            dimension_semantics=("parallel",),
            vmem_limit_bytes=vmem_limit),
        cost_estimate=cost,
    )(x, Wc, b2)


def split_gs_output(y):
    """Optional per-attribute view of the fused [N, 14] output.

    Perf-sensitive consumers should keep the fused array (index with
    GS_SLICES) instead of materializing five narrow HBM arrays here.
    """
    N = y.shape[0]
    return {
        "shs": y[:, SHS_SL].reshape(N, -1, 3),   # (N, 1, 3) since use_rgb=True
        "scaling": y[:, SCALE_SL],
        "offset_xyz": y[:, XYZ_SL],
        "opacity": y[:, OPA_SL],
        "rotation": y[:, ROT_SL],
        "use_rgb": True,
    }


def gslayer_forward(x, pts, W, b, **kwargs):
    """Module-semantics wrapper: fused kernel + attribute split."""
    return split_gs_output(gslayer_forward_fused(x, pts, W, b, **kwargs))


def make_params(key, in_channels):
    """Deterministic synthetic params (shapes follow GSLayer.__init__).

    The real module zero-inits most head weights; small random weights are used
    here so the matmul is exercised, with the module's prescribed biases.
    """
    kshs, kscale, kxyz, kopa, krot = jax.random.split(key, 5)
    scale = 0.05
    W = jnp.concatenate([
        scale * jax.random.normal(kshs, (in_channels, 3), jnp.float32),
        scale * jax.random.normal(kscale, (in_channels, 3), jnp.float32),
        scale * jax.random.normal(kxyz, (in_channels, 3), jnp.float32),
        scale * jax.random.normal(kopa, (in_channels, 1), jnp.float32),
        scale * jax.random.normal(krot, (in_channels, 4), jnp.float32),
    ], axis=1)                                                      # (C, 14)
    b = jnp.concatenate([
        jnp.zeros((3,), jnp.float32),                               # shs
        jnp.full((3,), INIT_SCALING, jnp.float32),                  # scaling
        jnp.zeros((3,), jnp.float32),                               # xyz
        jnp.full((1,), float(np.log(INIT_DENSITY / (1.0 - INIT_DENSITY))),
                 jnp.float32),                                      # opacity
        jnp.array([1.0, 0.0, 0.0, 0.0], jnp.float32),               # rotation
    ])                                                              # (14,)
    return W, b


def gslayer_reference(x, W, b):
    """Pure-JAX f32 reference for correctness check."""
    y = x @ W + b[None, :]
    shs = jax.nn.sigmoid(y[:, SHS_SL]).reshape(x.shape[0], -1, 3)
    scaling = jnp.clip(jnp.exp(y[:, SCALE_SL]), 0.0, CLIP_SCALING)
    offset = (jax.nn.sigmoid(y[:, XYZ_SL]) - 0.5) * XYZ_MAX_STEP
    opacity = jax.nn.sigmoid(y[:, OPA_SL])
    r = y[:, ROT_SL]
    rotation = r / jnp.maximum(
        jnp.sqrt(jnp.sum(r * r, axis=-1, keepdims=True)), 1e-12)
    return shs, scaling, offset, opacity, rotation


def _check(out, refs, atol):
    ref_shs, ref_scale, ref_off, ref_opa, ref_rot = refs
    def as_np(a):
        return np.asarray(a, dtype=np.float32)
    assert np.allclose(as_np(out["shs"]), as_np(ref_shs), atol=atol)
    assert np.allclose(as_np(out["scaling"]), as_np(ref_scale), atol=atol)
    assert np.allclose(as_np(out["offset_xyz"]), as_np(ref_off), atol=atol)
    assert np.allclose(as_np(out["opacity"]), as_np(ref_opa), atol=atol)
    assert np.allclose(as_np(out["rotation"]), as_np(ref_rot), atol=atol)


if __name__ == "__main__":
    # Small shapes; N deliberately NOT a multiple of 8/128/tm so the ragged
    # last block (masked reads + masked writeback) is exercised.
    N, C = 300, 64
    key = jax.random.PRNGKey(0)
    kx, kp, kparam = jax.random.split(key, 3)
    x = jax.random.normal(kx, (N, C), jnp.float32)
    pts = jax.random.normal(kp, (N, 3), jnp.float32)   # unused (xyz_offset=True)
    W, b = make_params(kparam, C)

    refs = gslayer_reference(x, W, b)

    # 1) Default fast path: f32 x in HBM, in-kernel bf16 cast, fused f32 output.
    out_default = gslayer_forward(x, pts, W, b)
    jax.block_until_ready(out_default["rotation"])
    _check(out_default, refs, atol=5e-2)

    # 2) Full-f32 path with a small tile so the grid has several steps plus a
    #    ragged last block (300 = 2*128 + 44).
    out_f32 = gslayer_forward(x, pts, W, b, tm=128, compute_dtype=jnp.float32)
    jax.block_until_ready(out_f32["rotation"])
    _check(out_f32, refs, atol=1e-5)

    # 3) Upstream-bf16 x (no in-kernel cast) + bf16 fused output (lane-light
    #    store path), checked at loose tolerance.
    fused_bf16 = gslayer_forward_fused(x.astype(jnp.bfloat16), pts, W, b,
                                       out_dtype=jnp.bfloat16)
    jax.block_until_ready(fused_bf16)
    _check(split_gs_output(fused_bf16.astype(jnp.float32)), refs, atol=5e-2)

    print("KERNEL_OK")
</pallas_src>

<mosaic_0001>
module attributes {stable_mosaic.version = 11 : i64} {
  func.func @gslayer_kernel(%arg0: i32, %arg1: memref<304x64xf32, #tpu.memory_space<vmem>>, %arg2: memref<64x14xbf16, #tpu.memory_space<vmem>>, %arg3: memref<1x14xf32, #tpu.memory_space<vmem>>, %arg4: memref<304x14xf32, #tpu.memory_space<vmem>>) attributes {dimension_semantics = [#tpu.dimension_semantics<parallel>], iteration_bounds = array<i64: 1>, scalar_prefetch = 0 : i64, scratch_operands = 0 : i64, tpu.core_type = #tpu.core_type<tc>, window_params = [{transform_indices = @transform_0, window_bounds = array<i64: 304, 64>}, {pipeline_mode = #tpu.pipeline_mode<synchronous>, transform_indices = @transform_1, window_bounds = array<i64: 64, 14>}, {pipeline_mode = #tpu.pipeline_mode<synchronous>, transform_indices = @transform_2, window_bounds = array<i64: 1, 14>}, {transform_indices = @transform_3, window_bounds = array<i64: 304, 14>}]} {
    %c0 = arith.constant 0 : index
    %c0_0 = arith.constant 0 : index
    %0 = vector.load %arg1[%c0, %c0_0] : memref<304x64xf32, #tpu.memory_space<vmem>>, vector<304x64xf32>
    %1 = arith.truncf %0 : vector<304x64xf32> to vector<304x64xbf16>
    %c0_1 = arith.constant 0 : index
    %c0_2 = arith.constant 0 : index
    %2 = vector.load %arg2[%c0_1, %c0_2] : memref<64x14xbf16, #tpu.memory_space<vmem>>, vector<64x14xbf16>
    %cst = arith.constant dense<0.000000e+00> : vector<304x14xf32>
    %3 = tpu.matmul %1, %2, %cst {dimension_numbers = #tpu.dot_dimension_numbers<[1], [0], [0], [1], [0, 0, 1, 1], [], []>} : vector<304x64xbf16>, vector<64x14xbf16>, vector<304x14xf32> -> vector<304x14xf32>
    %c0_3 = arith.constant 0 : index
    %c0_4 = arith.constant 0 : index
    %4 = vector.load %arg3[%c0_3, %c0_4] : memref<1x14xf32, #tpu.memory_space<vmem>>, vector<1x14xf32>
    %5 = vector.broadcast %4 : vector<1x14xf32> to vector<304x14xf32>
    %6 = arith.addf %3, %5 : vector<304x14xf32>
    %7 = tpu.iota {dimensions = array<i32: 1>} : vector<304x14xi32>
    %8 = arith.negf %6 : vector<304x14xf32>
    %9 = math.exp %8 : vector<304x14xf32>
    %cst_5 = arith.constant 1.000000e+00 : f32
    %10 = vector.broadcast %cst_5 : f32 to vector<304x14xf32>
    %11 = arith.addf %10, %9 : vector<304x14xf32>
    %12 = arith.divf %10, %11 : vector<304x14xf32>
    %13 = math.exp %6 : vector<304x14xf32>
    %cst_6 = arith.constant 0.000000e+00 : f32
    %cst_7 = arith.constant 2.000000e-01 : f32
    %14 = vector.broadcast %cst_6 : f32 to vector<304x14xf32>
    %15 = arith.maximumf %14, %13 : vector<304x14xf32>
    %16 = vector.broadcast %cst_7 : f32 to vector<304x14xf32>
    %17 = arith.minimumf %16, %15 : vector<304x14xf32>
    %c10_i32 = arith.constant 10 : i32
    %18 = vector.broadcast %c10_i32 : i32 to vector<304x14xi32>
    %19 = arith.cmpi sge, %7, %18 : vector<304x14xi32>
    %cst_8 = arith.constant 0.000000e+00 : f32
    %20 = vector.broadcast %cst_8 : f32 to vector<304x14xf32>
    %21 = arith.select %19, %6, %20 : vector<304x14xi1>, vector<304x14xf32>
    %22 = arith.mulf %21, %21 : vector<304x14xf32>
    %cst_9 = arith.constant dense<0.000000e+00> : vector<304xf32>
    %23 = vector.multi_reduction <add>, %22, %cst_9 [1] : vector<304x14xf32> to vector<304xf32>
    %24 = vector.shape_cast %23 : vector<304xf32> to vector<304x1xf32>
    %cst_10 = arith.constant 1.000000e-24 : f32
    %25 = vector.broadcast %cst_10 : f32 to vector<304x1xf32>
    %26 = arith.maximumf %24, %25 : vector<304x1xf32>
    %27 = math.rsqrt %26 : vector<304x1xf32>
    %28 = vector.broadcast %27 : vector<304x1xf32> to vector<304x14xf32>
    %29 = arith.mulf %6, %28 : vector<304x14xf32>
    %c3_i32 = arith.constant 3 : i32
    %30 = vector.broadcast %c3_i32 : i32 to vector<304x14xi32>
    %31 = arith.cmpi slt, %7, %30 : vector<304x14xi32>
    %c6_i32 = arith.constant 6 : i32
    %32 = vector.broadcast %c6_i32 : i32 to vector<304x14xi32>
    %33 = arith.cmpi slt, %7, %32 : vector<304x14xi32>
    %c9_i32 = arith.constant 9 : i32
    %34 = vector.broadcast %c9_i32 : i32 to vector<304x14xi32>
    %35 = arith.cmpi slt, %7, %34 : vector<304x14xi32>
    %cst_11 = arith.constant 5.000000e-01 : f32
    %36 = vector.broadcast %cst_11 : f32 to vector<304x14xf32>
    %37 = arith.subf %12, %36 : vector<304x14xf32>
    %cst_12 = arith.constant 3.750000e-02 : f32
    %38 = vector.broadcast %cst_12 : f32 to vector<304x14xf32>
    %39 = arith.mulf %37, %38 : vector<304x14xf32>
    %c10_i32_13 = arith.constant 10 : i32
    %40 = vector.broadcast %c10_i32_13 : i32 to vector<304x14xi32>
    %41 = arith.cmpi slt, %7, %40 : vector<304x14xi32>
    %42 = arith.select %41, %12, %29 : vector<304x14xi1>, vector<304x14xf32>
    %43 = arith.select %35, %39, %42 : vector<304x14xi1>, vector<304x14xf32>
    %44 = arith.select %33, %17, %43 : vector<304x14xi1>, vector<304x14xf32>
    %45 = arith.select %31, %12, %44 : vector<304x14xi1>, vector<304x14xf32>
    %c0_14 = arith.constant 0 : index
    %c0_15 = arith.constant 0 : index
    %46 = vector.load %arg4[%c0_14, %c0_15] : memref<304x14xf32, #tpu.memory_space<vmem>>, vector<304x14xf32>
    tpu.vector_store %arg4[%c0_14, %c0_15], %45 {strides = array<i32>} : memref<304x14xf32, #tpu.memory_space<vmem>>, vector<304x14xf32>,
    return
  }
  func.func @transform_0(%arg0: i32) -> (i32, i32) {
    %c0_i32 = arith.constant 0 : i32
    %c0_i32_0 = arith.constant 0 : i32
    return %arg0, %c0_i32 : i32, i32
  }
  func.func @transform_1(%arg0: i32) -> (i32, i32) {
    %c0_i32 = arith.constant 0 : i32
    %c0_i32_0 = arith.constant 0 : i32
    %c0_i32_1 = arith.constant 0 : i32
    return %c0_i32, %c0_i32_0 : i32, i32
  }
  func.func @transform_2(%arg0: i32) -> (i32, i32) {
    %c0_i32 = arith.constant 0 : i32
    %c0_i32_0 = arith.constant 0 : i32
    %c0_i32_1 = arith.constant 0 : i32
    return %c0_i32, %c0_i32_0 : i32, i32
  }
  func.func @transform_3(%arg0: i32) -> (i32, i32) {
    %c0_i32 = arith.constant 0 : i32
    %c0_i32_0 = arith.constant 0 : i32
    return %arg0, %c0_i32 : i32, i32
  }
}

</mosaic_0001>

<bundles_post_ra>
// kernel: gslayer_forward_fused.1
= control target key start
LH: loop header
LB: loop body
LE: loop exit
PB: predicated region body
PF: predicated region fallthrough
CT: control target
= control target key end

     0   :  { %v1841_v0 = vmov 0.0   ;;  %vm1842_vm0 = vmmov 0   ;;  %vm111_vm1 = vcmask 523264   ;;  %v354_v62 = vlaneseq  ;;  %s3388_s1 = inlined_call_operand.vmem [shape: bf16[64,14], index: 1, kind: input, shape index: {}]   ;;  %s3389_s0 = inlined_call_operand.vmem [shape: f32[300,64], index: 0, kind: input, shape index: {}]   ;;  %s3390_s2 = inlined_call_operand.vmem [shape: f32[1,14], index: 2, kind: input, shape index: {}]   ;;  %s3391_s3 = inlined_call_operand.vmem [shape: f32[300,14], index: 3, kind: output, shape index: {}]  }
   0x1   :  { %1439 = vmatprep.subr.bf16.mxu0 %v1841_v0  ;;  %1523 = vmatprep.subr.bf16.mxu1 %v1841_v0  ;;  %v1533_v1 = vld [vmem:[%s3388_s1] sm:$0xff]   ;;  %v1534_v2 = vld [vmem:[%s3388_s1 + $0x8] sm:$0xff]   ;;  %v1535_v3 = vld [vmem:[%s3388_s1 + $0x10] sm:$0xff]   ;;  %vm813_vm3 = vcmask 113664  }
   0x2   :  { %1447 = vmatprep.mubr.msk.bf16.mxu0 %vm1842_vm0, %v1841_v0  ;;  %1487 = vmatprep.mubr.msk.bf16.mxu1 %vm1842_vm0, %v1841_v0  ;;  %v1536_v4 = vld [vmem:[%s3388_s1 + $0x18] sm:$0xff]   ;;  %v15_v5 = vld [vmem:[%s3389_s0] sm:$0xff]  ;;  %v16_v6 = vld [vmem:[%s3389_s0 + $0x8] sm:$0xff]  ;;  %v2054_v63 = vand.u32 127, %v354_v62 }
   0x3   :  { %1440 = vmatpush3.bf16.msra.mxu0 %v1533_v1  ;;  %1527 = vmatpush3.bf16.msra.mxu1 %v1533_v1  ;;  %v35_v7 = vld [vmem:[%s3389_s0 + $0xa0] sm:$0xff]  ;;  %v36_v8 = vld [vmem:[%s3389_s0 + $0xa8] sm:$0xff]  ;;  %v53_v9 = vpack.c.bf16 %v16_v6, %v15_v5  ;;  %v17_v11 = vld [vmem:[%s3389_s0 + $0x10] sm:$0xff] }
   0x4   :  { %1441 = vmatprep.subr.bf16.mxu0 %v1841_v0  ;;  %1524 = vmatprep.subr.bf16.mxu1 %v1841_v0  ;;  %v63_v10 = vpack.c.bf16 %v36_v8, %v35_v7  ;;  %v18_v12 = vld [vmem:[%s3389_s0 + $0x18] sm:$0xff]  ;;  %v37_v13 = vld [vmem:[%s3389_s0 + $0xb0] sm:$0xff]  ;;  %v19_v17 = vld [vmem:[%s3389_s0 + $0x20] sm:$0xff]  ;;  %vm736_vm2 = vcmp.ge.s32.totalorder %v2054_v63, 10  ;;  %vm1121_vm4 = vcmp.lt.s32.totalorder %v2054_v63, 10  ;;  %vm1044_vm5 = vcmp.lt.s32.totalorder %v2054_v63, 9 }
   0x5   :  { %v38_v14 = vld [vmem:[%s3389_s0 + $0xb8] sm:$0xff]  ;;  %v54_v15 = vpack.c.bf16 %v18_v12, %v17_v11  ;;  %v20_v18 = vld [vmem:[%s3389_s0 + $0x28] sm:$0xff]  ;;  %v39_v19 = vld [vmem:[%s3389_s0 + $0xc0] sm:$0xff]  ;;  %vm1043_vm6 = vcmp.lt.s32.totalorder %v2054_v63, 6  ;;  %vm1042_vm7 = vcmp.lt.s32.totalorder %v2054_v63, 3 }
   0x6   :  { %v64_v16 = vpack.c.bf16 %v38_v14, %v37_v13  ;;  %v40_v20 = vld [vmem:[%s3389_s0 + $0xc8] sm:$0xff]  ;;  %v55_v21 = vpack.c.bf16 %v20_v18, %v19_v17  ;;  %v21_v23 = vld [vmem:[%s3389_s0 + $0x30] sm:$0xff]  ;;  %v22_v24 = vld [vmem:[%s3389_s0 + $0x38] sm:$0xff] }
   0x7   :  { %1442 = vmatpush3.bf16.msra.mxu0 %v1534_v2  ;;  %1528 = vmatpush3.bf16.msra.mxu1 %v1534_v2  ;;  %v65_v22 = vpack.c.bf16 %v40_v20, %v39_v19  ;;  %v41_v25 = vld [vmem:[%s3389_s0 + $0xd0] sm:$0xff]  ;;  %v42_v26 = vld [vmem:[%s3389_s0 + $0xd8] sm:$0xff]  ;;  %v56_v27 = vpack.c.bf16 %v22_v24, %v21_v23  ;;  %v23_v29 = vld [vmem:[%s3389_s0 + $0x40] sm:$0xff] }
   0x8   :  { %1443 = vmatprep.subr.bf16.mxu0 %v1841_v0  ;;  %1525 = vmatprep.subr.bf16.mxu1 %v1841_v0  ;;  %v66_v28 = vpack.c.bf16 %v42_v26, %v41_v25  ;;  %v24_v30 = vld [vmem:[%s3389_s0 + $0x48] sm:$0xff]  ;;  %v43_v31 = vld [vmem:[%s3389_s0 + $0xe0] sm:$0xff]  ;;  %v25_v35 = vld [vmem:[%s3389_s0 + $0x50] sm:$0xff] }
   0x9   :  { %v44_v32 = vld [vmem:[%s3389_s0 + $0xe8] sm:$0xff]  ;;  %v57_v33 = vpack.c.bf16 %v24_v30, %v23_v29  ;;  %v26_v36 = vld [vmem:[%s3389_s0 + $0x58] sm:$0xff]  ;;  %v45_v37 = vld [vmem:[%s3389_s0 + $0xf0] sm:$0xff] }
   0xa   :  { %v67_v34 = vpack.c.bf16 %v44_v32, %v43_v31  ;;  %v46_v38 = vld [vmem:[%s3389_s0 + $0xf8] sm:$0xff]  ;;  %v58_v39 = vpack.c.bf16 %v26_v36, %v25_v35  ;;  %v27_v41 = vld [vmem:[%s3389_s0 + $0x60] sm:$0xff]  ;;  %v28_v42 = vld [vmem:[%s3389_s0 + $0x68] sm:$0xff] }
   0xb   :  { %1444 = vmatpush3.bf16.msra.mxu0 %v1535_v3  ;;  %1529 = vmatpush3.bf16.msra.mxu1 %v1535_v3  ;;  %v68_v40 = vpack.c.bf16 %v46_v38, %v45_v37  ;;  %v47_v43 = vld [vmem:[%s3389_s0 + $0x100] sm:$0xff]  ;;  %v48_v44 = vld [vmem:[%s3389_s0 + $0x108] sm:$0xff]  ;;  %v59_v45 = vpack.c.bf16 %v28_v42, %v27_v41  ;;  %v29_v47 = vld [vmem:[%s3389_s0 + $0x70] sm:$0xff] }
   0xc   :  { %1445 = vmatprep.subr.bf16.mxu0 %v1841_v0  ;;  %1526 = vmatprep.subr.bf16.mxu1 %v1841_v0  ;;  %v69_v46 = vpack.c.bf16 %v48_v44, %v47_v43  ;;  %v30_v48 = vld [vmem:[%s3389_s0 + $0x78] sm:$0xff]  ;;  %v49_v49 = vld [vmem:[%s3389_s0 + $0x110] sm:$0xff]  ;;  %v31_v53 = vld [vmem:[%s3389_s0 + $0x80] sm:$0xff] }
   0xd   :  { %v50_v50 = vld [vmem:[%s3389_s0 + $0x118] sm:$0xff]  ;;  %v60_v51 = vpack.c.bf16 %v30_v48, %v29_v47  ;;  %v32_v54 = vld [vmem:[%s3389_s0 + $0x88] sm:$0xff]  ;;  %v51_v55 = vld [vmem:[%s3389_s0 + $0x120] sm:$0xff] }
   0xe   :  { %v70_v52 = vpack.c.bf16 %v50_v50, %v49_v49  ;;  %v52_v56 = vld [vmem:[%s3389_s0 + $0x128] sm:$0xff]  ;;  %v61_v57 = vpack.c.bf16 %v32_v54, %v31_v53  ;;  %v33_v59 = vld [vmem:[%s3389_s0 + $0x90] sm:$0xff]  ;;  %v34_v60 = vld [vmem:[%s3389_s0 + $0x98] sm:$0xff] }
   0xf   :  { %1446 = vmatpush3.bf16.msra.mxu0 %v1536_v4  ;;  %1530 = vmatpush3.bf16.msra.mxu1 %v1536_v4  ;;  %v71_v58 = vpack.c.bf16 %v52_v56, %v51_v55  ;;  %v62_v61 = vpack.c.bf16 %v34_v60, %v33_v59  ;;  %v2059_v1 = vld [vmem:[%s3390_s2] ss:$0 sm:$0xff] }
  0x12   :  { %1448 = vmatmul.mubr.msk.bf16.vlgmr.msra.gmra.mrb[0].mxu0 %vm111_vm1, %v53_v9  ;;  %1488 = vmatmul.mubr.msk.bf16.vlgmr.msra.gmra.mrb[0].mxu1 %vm111_vm1, %v63_v10 }
  0x13   :  { %1451 = vmatprep.mubr.msk.bf16.mxu0 %vm1842_vm0, %v1841_v0  ;;  %1491 = vmatprep.mubr.msk.bf16.mxu1 %vm1842_vm0, %v1841_v0 }
  0x1a   :  { %1452 = vmatmul.mubr.msk.bf16.gmra.mrb[4].mxu0 %vm111_vm1, %v54_v15  ;;  %1492 = vmatmul.mubr.msk.bf16.gmra.mrb[4].mxu1 %vm111_vm1, %v64_v16 }
  0x1b   :  { %1455 = vmatprep.mubr.msk.bf16.mxu0 %vm1842_vm0, %v1841_v0  ;;  %1495 = vmatprep.mubr.msk.bf16.mxu1 %vm1842_vm0, %v1841_v0 }
  0x22   :  { %1456 = vmatmul.mubr.msk.bf16.gmra.mrb[8].mxu0 %vm111_vm1, %v55_v21  ;;  %1496 = vmatmul.mubr.msk.bf16.gmra.mrb[8].mxu1 %vm111_vm1, %v65_v22 }
  0x23   :  { %1459 = vmatprep.mubr.msk.bf16.mxu0 %vm1842_vm0, %v1841_v0  ;;  %1499 = vmatprep.mubr.msk.bf16.mxu1 %vm1842_vm0, %v1841_v0 }
  0x2a   :  { %1460 = vmatmul.mubr.msk.bf16.gmra.mrb[12].mxu0 %vm111_vm1, %v56_v27  ;;  %1500 = vmatmul.mubr.msk.bf16.gmra.mrb[12].mxu1 %vm111_vm1, %v66_v28 }
  0x2b   :  { %1463 = vmatprep.mubr.msk.bf16.mxu0 %vm1842_vm0, %v1841_v0  ;;  %1503 = vmatprep.mubr.msk.bf16.mxu1 %vm1842_vm0, %v1841_v0 }
  0x32   :  { %1464 = vmatmul.mubr.msk.bf16.gmra.mrb[16].mxu0 %vm111_vm1, %v57_v33  ;;  %1504 = vmatmul.mubr.msk.bf16.gmra.mrb[16].mxu1 %vm111_vm1, %v67_v34 }
  0x33   :  { %1467 = vmatprep.mubr.msk.bf16.mxu0 %vm1842_vm0, %v1841_v0  ;;  %1507 = vmatprep.mubr.msk.bf16.mxu1 %vm1842_vm0, %v1841_v0 }
  0x3a   :  { %1468 = vmatmul.mubr.msk.bf16.gmra.mrb[20].mxu0 %vm111_vm1, %v58_v39  ;;  %1508 = vmatmul.mubr.msk.bf16.gmra.mrb[20].mxu1 %vm111_vm1, %v68_v40 }
  0x3b   :  { %1471 = vmatprep.mubr.msk.bf16.mxu0 %vm1842_vm0, %v1841_v0  ;;  %1511 = vmatprep.mubr.msk.bf16.mxu1 %vm1842_vm0, %v1841_v0 }
  0x42   :  { %1472 = vmatmul.mubr.msk.bf16.gmra.mrb[24].mxu0 %vm111_vm1, %v59_v45  ;;  %1512 = vmatmul.mubr.msk.bf16.gmra.mrb[24].mxu1 %vm111_vm1, %v69_v46 }
  0x43   :  { %1475 = vmatprep.mubr.msk.bf16.mxu0 %vm1842_vm0, %v1841_v0  ;;  %1515 = vmatprep.mubr.msk.bf16.mxu1 %vm1842_vm0, %v1841_v0 }
  0x4a   :  { %1476 = vmatmul.mubr.msk.bf16.gmra.mrb[28].mxu0 %vm111_vm1, %v60_v51  ;;  %1516 = vmatmul.mubr.msk.bf16.gmra.mrb[28].mxu1 %vm111_vm1, %v70_v52 }
  0x4b   :  { %1479 = vmatprep.mubr.msk.bf16.mxu0 %vm1842_vm0, %v1841_v0  ;;  %1519 = vmatprep.mubr.msk.bf16.mxu1 %vm1842_vm0, %v1841_v0 }
  0x52   :  { %1480 = vmatmul.mubr.msk.bf16.gmra.mrb[32].mxu0 %vm111_vm1, %v61_v57  ;;  %1520 = vmatmul.mubr.msk.bf16.gmra.mrb[32].mxu1 %vm111_vm1, %v71_v58 }
  0x53   :  { %1483 = vmatprep.mubr.msk.bf16.mxu0 %vm1842_vm0, %v1841_v0 }
  0x5a   :  { %1484 = vmatmul.mubr.msk.bf16.gmra.mrb[36].mxu0 %vm111_vm1, %v62_v61 }
  0xe5   :  { %v203_v0 = vpop.f32.mrb[0].mxu0  ;;  %v283_v2 = vpop.f32.mrb[0].mxu1 }
  0xe6   :  { %v2062_v3 = vadd.f32 %v2059_v1, %v203_v0  ;;  %v2065_v4 = vadd.f32 %v2059_v1, %v283_v2  ;;  %v1449_v5 = vpop.f32.mrb[1].mxu0  ;;  %v1489_v6 = vpop.f32.mrb[1].mxu1 }
  0xe7   :  { %v206_v7 = vpop.f32.mrb[2].mxu0  ;;  %v286_v8 = vpop.f32.mrb[2].mxu1 }
  0xe8   :  { %v2069_v9 = vadd.f32 %v2059_v1, %v206_v7  ;;  %v2072_v10 = vadd.f32 %v2059_v1, %v286_v8  ;;  %v1450_v11 = vpop.f32.mrb[3].mxu0  ;;  %v1490_v12 = vpop.f32.mrb[3].mxu1  ;;  %v737_v13 = vsel %vm736_vm2, %v2062_v3, 0.0  ;;  %v757_v14 = vsel %vm736_vm2, %v2065_v4, 0.0 }
  0xe9   :  { %v775_v15 = vmul.f32 %v737_v13, %v737_v13  ;;  %v795_v19 = vmul.f32 %v757_v14, %v757_v14 }
  0xea   :  { %v758_v16 = vsel %vm736_vm2, %v2072_v10, 0.0  ;;  %v738_v22 = vsel %vm736_vm2, %v2069_v9, 0.0 }
  0xeb   :  { %v814_v17 = vsel %vm813_vm3, %v775_v15, 0.0  ;;  %v796_v18 = vmul.f32 %v758_v16, %v758_v16  ;;  %v874_v25 = vsel %vm813_vm3, %v795_v19, 0.0  ;;  %v776_v33 = vmul.f32 %v738_v22, %v738_v22 }
  0xec   :  { %815 = vadd.xlane.f32.xlu0 %v814_v17 }
  0xed   :  { %v211_v20 = vpop.f32.mrb[4].mxu0  ;;  %v291_v21 = vpop.f32.mrb[4].mxu1  ;;  %v877_v23 = vsel %vm813_vm3, %v796_v18, 0.0  ;;  %v817_v36 = vsel %vm813_vm3, %v776_v33, 0.0 }
  0xee   :  { %v1453_v24 = vpop.f32.mrb[5].mxu0  ;;  %v1493_v26 = vpop.f32.mrb[5].mxu1  ;;  %v2090_v27 = vadd.f32 %v2059_v1, %v211_v20  ;;  %878 = vadd.xlane.f32.xlu1 %v877_v23  ;;  %v2096_v32 = vadd.f32 %v2059_v1, %v291_v21 }
  0xef   :  { %v214_v28 = vpop.f32.mrb[6].mxu0  ;;  %v294_v29 = vpop.f32.mrb[6].mxu1 }
  0xf0   :  { %v2093_v30 = vadd.f32 %v2059_v1, %v214_v28  ;;  %v1454_v31 = vpop.f32.mrb[7].mxu0  ;;  %v1494_v34 = vpop.f32.mrb[7].mxu1  ;;  %875 = vadd.xlane.f32.xlu0 %v874_v25  ;;  %v739_v35 = vsel %vm736_vm2, %v2090_v27, 0.0  ;;  %v759_v38 = vsel %vm736_vm2, %v2096_v32, 0.0  ;;  %v2111_v52 = vadd.f32 %v2059_v1, %v294_v29 }
  0xf1   :  { %v777_v37 = vmul.f32 %v739_v35, %v739_v35  ;;  %v797_v41 = vmul.f32 %v759_v38, %v759_v38 }
  0xf2   :  { %v740_v39 = vsel %vm736_vm2, %v2093_v30, 0.0  ;;  %v760_v57 = vsel %vm736_vm2, %v2111_v52, 0.0 }
  0xf3   :  { %v820_v43 = vsel %vm813_vm3, %v777_v37, 0.0  ;;  %v778_v45 = vmul.f32 %v740_v39, %v740_v39  ;;  %v880_v48 = vsel %vm813_vm3, %v797_v41, 0.0  ;;  %v798_v62 = vmul.f32 %v760_v57, %v760_v57 }
  0xf4   :  { %818 = vadd.xlane.f32.xlu0 %v817_v36  ;;  %821 = vadd.xlane.f32.xlu1 %v820_v43 }
  0xf5   :  { %v219_v40 = vpop.f32.mrb[8].mxu0  ;;  %v299_v42 = vpop.f32.mrb[8].mxu1  ;;  %v823_v53 = vsel %vm813_vm3, %v778_v45, 0.0  ;;  %v883_v8 = vsel %vm813_vm3, %v798_v62, 0.0 }
  0xf6   :  { %v1457_v44 = vpop.f32.mrb[9].mxu0  ;;  %v1497_v46 = vpop.f32.mrb[9].mxu1  ;;  %v2115_v54 = vadd.f32 %v2059_v1, %v219_v40  ;;  %v2121_v61 = vadd.f32 %v2059_v1, %v299_v42 }
  0xf7   :  { %v222_v47 = vpop.f32.mrb[10].mxu0  ;;  %v302_v49 = vpop.f32.mrb[10].mxu1 }
  0xf8   :  { %v1458_v50 = vpop.f32.mrb[11].mxu0  ;;  %881 = vadd.xlane.f32.xlu0 %v880_v48  ;;  %v1498_v51 = vpop.f32.mrb[11].mxu1  ;;  %824 = vadd.xlane.f32.xlu1 %v823_v53  ;;  %3432 = vst [vmem:[#allocation2_spill] sm:$0xff] %v2121_v61  ;;  %v741_v5 = vsel %vm736_vm2, %v2115_v54, 0.0  ;;  %v2127_v7 = vadd.f32 %v2059_v1, %v222_v47  ;;  %v2131_v12 = vadd.f32 %v2059_v1, %v302_v49  ;;  %v761_v14 = vsel %vm736_vm2, %v2121_v61, 0.0 }
  0xf9   :  { %v779_v11 = vmul.f32 %v741_v5, %v741_v5  ;;  %v799_v15 = vmul.f32 %v761_v14, %v761_v14 }
  0xfa   :  { %3433 = vst [vmem:[#allocation3_spill] sm:$0xff] %v2127_v7  ;;  %3434 = vst [vmem:[#allocation4_spill] sm:$0xff] %v2131_v12  ;;  %v742_v18 = vsel %vm736_vm2, %v2127_v7, 0.0  ;;  %v762_v25 = vsel %vm736_vm2, %v2131_v12, 0.0 }
  0xfb   :  { %v826_v13 = vsel %vm813_vm3, %v779_v11, 0.0  ;;  %v886_v20 = vsel %vm813_vm3, %v799_v15, 0.0  ;;  %v780_v21 = vmul.f32 %v742_v18, %v742_v18  ;;  %v800_v33 = vmul.f32 %v762_v25, %v762_v25 }
  0xfc   :  { %884 = vadd.xlane.f32.xlu1 %v883_v8  ;;  %827 = vadd.xlane.f32.xlu0 %v826_v13 }
  0xfd   :  { %v227_v55 = vpop.f32.mrb[12].mxu0  ;;  %v307_v56 = vpop.f32.mrb[12].mxu1  ;;  %v829_v29 = vsel %vm813_vm3, %v780_v21, 0.0  ;;  %v889_v36 = vsel %vm813_vm3, %v800_v33, 0.0 }
  0xfe   :  { %v1461_v58 = vpop.f32.mrb[13].mxu0  ;;  %v1501_v59 = vpop.f32.mrb[13].mxu1  ;;  %v2142_v24 = vadd.f32 %v2059_v1, %v227_v55  ;;  %v2149_v34 = vadd.f32 %v2059_v1, %v307_v56 }
  0xff   :  { %v230_v60 = vpop.f32.mrb[14].mxu0  ;;  %v310_v2 = vpop.f32.mrb[14].mxu1 }
 0x100   :  { %v1462_v0 = vpop.f32.mrb[15].mxu0  ;;  %v1502_v6 = vpop.f32.mrb[15].mxu1  ;;  %3435 = vst [vmem:[#allocation5_spill] sm:$0xff] %v2142_v24  ;;  %887 = vadd.xlane.f32.xlu0 %v886_v20  ;;  %830 = vadd.xlane.f32.xlu1 %v829_v29  ;;  %3436 = vst [vmem:[#allocation6_spill] sm:$0xff] %v2149_v34  ;;  %v743_v35 = vsel %vm736_vm2, %v2142_v24, 0.0  ;;  %v2156_v39 = vadd.f32 %v2059_v1, %v230_v60  ;;  %v763_v45 = vsel %vm736_vm2, %v2149_v34, 0.0 }
 0x101   :  { %v781_v40 = vmul.f32 %v743_v35, %v743_v35  ;;  %v801_v48 = vmul.f32 %v763_v45, %v763_v45  ;;  %v2168_v51 = vadd.f32 %v2059_v1, %v310_v2 }
 0x102   :  { %3437 = vst [vmem:[#allocation7_spill] sm:$0xff] %v2156_v39  ;;  %v744_v50 = vsel %vm736_vm2, %v2156_v39, 0.0 }
 0x103   :  { %v832_v44 = vsel %vm813_vm3, %v781_v40, 0.0  ;;  %3438 = vst [vmem:[#allocation8_spill] sm:$0xff] %v2168_v51  ;;  %v892_v55 = vsel %vm813_vm3, %v801_v48, 0.0  ;;  %v782_v56 = vmul.f32 %v744_v50, %v744_v50  ;;  %v764_v60 = vsel %vm736_vm2, %v2168_v51, 0.0 }
 0x104   :  { %890 = vadd.xlane.f32.xlu1 %v889_v36  ;;  %833 = vadd.xlane.f32.xlu0 %v832_v44  ;;  %v802_v5 = vmul.f32 %v764_v60, %v764_v60 }
 0x105   :  { %v235_v16 = vpop.f32.mrb[16].mxu0  ;;  %v315_v17 = vpop.f32.mrb[16].mxu1  ;;  %v835_v58 = vsel %vm813_vm3, %v782_v56, 0.0 }
 0x106   :  { %v1465_v19 = vpop.f32.mrb[17].mxu0  ;;  %v1505_v23 = vpop.f32.mrb[17].mxu1  ;;  %v2171_v53 = vadd.f32 %v2059_v1, %v235_v16  ;;  %v2189_v14 = vadd.f32 %v2059_v1, %v315_v17  ;;  %v895_v16 = vsel %vm813_vm3, %v802_v5, 0.0 }
 0x107   :  { %v238_v22 = vpop.f32.mrb[18].mxu0  ;;  %v318_v28 = vpop.f32.mrb[18].mxu1 }
 0x108   :  { %v1466_v26 = vpop.f32.mrb[19].mxu0  ;;  %v1506_v31 = vpop.f32.mrb[19].mxu1  ;;  %3439 = vst [vmem:[#allocation9_spill] sm:$0xff] %v2171_v53  ;;  %893 = vadd.xlane.f32.xlu0 %v892_v55  ;;  %836 = vadd.xlane.f32.xlu1 %v835_v58  ;;  %v745_v62 = vsel %vm736_vm2, %v2171_v53, 0.0  ;;  %v2186_v13 = vadd.f32 %v2059_v1, %v238_v22  ;;  %3441 = vst [vmem:[#allocation11_spill] sm:$0xff] %v2189_v14  ;;  %v2196_v20 = vadd.f32 %v2059_v1, %v318_v28 }
 0x109   :  { %v783_v6 = vmul.f32 %v745_v62, %v745_v62  ;;  %v765_v21 = vsel %vm736_vm2, %v2189_v14, 0.0 }
 0x10a   :  { %3440 = vst [vmem:[#allocation10_spill] sm:$0xff] %v2186_v13  ;;  %3442 = vst [vmem:[#allocation12_spill] sm:$0xff] %v2196_v20  ;;  %v746_v17 = vsel %vm736_vm2, %v2186_v13, 0.0  ;;  %v803_v25 = vmul.f32 %v765_v21, %v765_v21  ;;  %v766_v40 = vsel %vm736_vm2, %v2196_v20, 0.0 }
 0x10b   :  { %v838_v18 = vsel %vm813_vm3, %v783_v6, 0.0  ;;  %v784_v31 = vmul.f32 %v746_v17, %v746_v17  ;;  %v804_v45 = vmul.f32 %v766_v40, %v766_v40 }
 0x10c   :  { %896 = vadd.xlane.f32.xlu1 %v895_v16  ;;  %839 = vadd.xlane.f32.xlu0 %v838_v18  ;;  %v898_v36 = vsel %vm813_vm3, %v803_v25, 0.0 }
 0x10d   :  { %v243_v37 = vpop.f32.mrb[20].mxu0  ;;  %v323_v38 = vpop.f32.mrb[20].mxu1  ;;  %v841_v44 = vsel %vm813_vm3, %v784_v31, 0.0 }
 0x10e   :  { %v1469_v41 = vpop.f32.mrb[21].mxu0  ;;  %v1509_v42 = vpop.f32.mrb[21].mxu1  ;;  %v2213_v35 = vadd.f32 %v2059_v1, %v243_v37  ;;  %v2224_v48 = vadd.f32 %v2059_v1, %v323_v38 }
 0x10f   :  { %v246_v43 = vpop.f32.mrb[22].mxu0  ;;  %v2162_v47 = vpop.f32.mrb[22].mxu1 }
 0x110   :  { %v1470_v46 = vpop.f32.mrb[23].mxu0  ;;  %v1510_v49 = vpop.f32.mrb[23].mxu1  ;;  %3443 = vst [vmem:[#allocation13_spill] sm:$0xff] %v2213_v35  ;;  %899 = vadd.xlane.f32.xlu0 %v898_v36  ;;  %842 = vadd.xlane.f32.xlu1 %v841_v44  ;;  %3445 = vst [vmem:[#allocation15_spill] sm:$0xff] %v2224_v48  ;;  %v747_v37 = vsel %vm736_vm2, %v2213_v35, 0.0  ;;  %v767_v38 = vsel %vm736_vm2, %v2224_v48, 0.0  ;;  %v2247_v18 = vadd.f32 %v2059_v1, %v2162_v47 }
 0x111   :  { %v2221_v46 = vadd.f32 %v2059_v1, %v246_v43  ;;  %v901_v49 = vsel %vm813_vm3, %v804_v45, 0.0  ;;  %v785_v50 = vmul.f32 %v747_v37, %v747_v37 }
 0x112   :  { %3446 = vst [vmem:[#allocation16_spill] sm:$0xff] %v2247_v18 }
 0x113   :  { %3444 = vst [vmem:[#allocation14_spill] sm:$0xff] %v2221_v46  ;;  %v748_v62 = vsel %vm736_vm2, %v2221_v46, 0.0 }
 0x114   :  { %902 = vadd.xlane.f32.xlu1 %v901_v49  ;;  %v786_v16 = vmul.f32 %v748_v62, %v748_v62  ;;  %v1360_v49 = vmul.f32 -1.442695, %v2065_v4 }
 0x115   :  { %v251_v57 = vpop.f32.mrb[24].mxu0  ;;  %v2183_v2 = vpop.f32.mrb[24].mxu1 }
 0x116   :  { %v1473_v59 = vpop.f32.mrb[25].mxu0  ;;  %v1513_v11 = vpop.f32.mrb[25].mxu1  ;;  %v847_v17 = vsel %vm813_vm3, %v786_v16, 0.0 }
 0x117   :  { %v2181_v0 = vpop.f32.mrb[26].mxu0  ;;  %v2191_v15 = vpop.f32.mrb[26].mxu1  ;;  %v844_v59 = vsel %vm813_vm3, %v785_v50, 0.0  ;;  %v805_v11 = vmul.f32 %v767_v38, %v767_v38  ;;  %v1341_v50 = vmul.f32 -1.442695, %v2069_v9 }
 0x118   :  { %v1474_v8 = vpop.f32.mrb[27].mxu0  ;;  %v1514_v19 = vpop.f32.mrb[27].mxu1  ;;  %845 = vadd.xlane.f32.xlu0 %v844_v59  ;;  %848 = vadd.xlane.f32.xlu1 %v847_v17  ;;  %v624_v38 = vmul.f32 1.442695, %v2065_v4  ;;  %v2287_v62 = vadd.f32 %v2059_v1, %v2191_v15  ;;  %v586_v17 = vmul.f32 1.442695, %v2069_v9 }
 0x119   :  { %v2250_v19 = vadd.f32 %v2059_v1, %v251_v57  ;;  %v904_v21 = vsel %vm813_vm3, %v805_v11, 0.0  ;;  %v626_v15 = vmul.f32 1.442695, %v2072_v10 }
 0x11a   :  { %3450 = vst [vmem:[#allocation20_spill] sm:$0xff] %v2287_v62 }
 0x11b   :  { %3447 = vst [vmem:[#allocation17_spill] sm:$0xff] %v2250_v19  ;;  %v749_v47 = vsel %vm736_vm2, %v2250_v19, 0.0 }
 0x11c   :  { %905 = vadd.xlane.f32.xlu0 %v904_v21  ;;  %v787_v36 = vmul.f32 %v749_v47, %v749_v47  ;;  %v1342_v21 = vmul.f32 -1.442695, %v2090_v27 }
 0x11d   :  { %v2204_v22 = vpop.f32.mrb[28].mxu0  ;;  %v2206_v23 = vpop.f32.mrb[28].mxu1 }
 0x11e   :  { %v1477_v26 = vpop.f32.mrb[29].mxu0  ;;  %v1517_v29 = vpop.f32.mrb[29].mxu1  ;;  %v850_v37 = vsel %vm813_vm3, %v787_v36, 0.0  ;;  %v588_v36 = vmul.f32 1.442695, %v2090_v27 }
 0x11f   :  { %v2208_v33 = vpop.f32.mrb[30].mxu0  ;;  %v2210_v28 = vpop.f32.mrb[30].mxu1  ;;  %v1340_v26 = vmul.f32 -1.442695, %v2062_v3  ;;  %v768_v29 = vsel %vm736_vm2, %v2247_v18, 0.0 }
 0x120   :  { %v1478_v41 = vpop.f32.mrb[31].mxu0  ;;  %v1518_v42 = vpop.f32.mrb[31].mxu1  ;;  %v806_v31 = vmul.f32 %v768_v29, %v768_v29  ;;  %851 = vadd.xlane.f32.xlu0 %v850_v37  ;;  %v1343_v29 = vmul.f32 -1.442695, %v2093_v30  ;;  %v1362_v37 = vmul.f32 -1.442695, %v2096_v32 }
 0x121   :  { %v2267_v41 = vadd.f32 %v2059_v1, %v2181_v0  ;;  %v2271_v42 = vadd.f32 %v2059_v1, %v2183_v2  ;;  %1537 = vpow2.f32 %v1340_v26 }
 0x122   :  { %v907_v45 = vsel %vm813_vm3, %v806_v31, 0.0  ;;  %1539 = vpow2.f32 %v1360_v49 }
 0x123   :  { %3448 = vst [vmem:[#allocation18_spill] sm:$0xff] %v2267_v41  ;;  %3449 = vst [vmem:[#allocation19_spill] sm:$0xff] %v2271_v42  ;;  %908 = vadd.xlane.f32.xlu1 %v907_v45  ;;  %v769_v0 = vsel %vm736_vm2, %v2271_v42, 0.0  ;;  %v750_v2 = vsel %vm736_vm2, %v2267_v41, 0.0  ;;  %1541 = vpow2.f32 %v1341_v50  ;;  %v2313_v45 = vadd.f32 %v2059_v1, %v2206_v23 }
 0x124   :  { %v807_v59 = vmul.f32 %v769_v0, %v769_v0  ;;  %v590_v0 = vmul.f32 1.442695, %v2093_v30 }
 0x125   :  { %v2230_v55 = vpop.f32.mrb[32].mxu0  ;;  %v2232_v56 = vpop.f32.mrb[32].mxu1 }
 0x126   :  { %v1481_v58 = vpop.f32.mrb[33].mxu0  ;;  %v1521_v60 = vpop.f32.mrb[33].mxu1  ;;  %v910_v11 = vsel %vm813_vm3, %v807_v59, 0.0  ;;  %v2325_v23 = vadd.f32 %v2059_v1, %v2230_v55  ;;  %v628_v59 = vmul.f32 1.442695, %v2096_v32 }
 0x127   :  { %v2235_v43 = vpop.f32.mrb[34].mxu0  ;;  %v2243_v6 = vpop.f32.mrb[34].mxu1  ;;  %v584_v58 = vmul.f32 1.442695, %v2062_v3  ;;  %v788_v60 = vmul.f32 %v750_v2, %v750_v2  ;;  %911 = vadd.xlane.f32.xlu0 %v910_v11  ;;  %v2321_v2 = vadd.f32 %v2059_v1, %v2210_v28 }
 0x128   :  { %v1482_v5 = vpop.f32.mrb[35].mxu0  ;;  %v1522_v8 = vpop.f32.mrb[35].mxu1 }
 0x129   :  { %v2291_v5 = vadd.f32 %v2059_v1, %v2204_v22  ;;  %v1361_v8 = vmul.f32 -1.442695, %v2072_v10  ;;  %v853_v16 = vsel %vm813_vm3, %v788_v60, 0.0  ;;  %1543 = vpow2.f32 %v584_v58 }
 0x12a   :  { %854 = vadd.xlane.f32.xlu1 %v853_v16  ;;  %1545 = vpow2.f32 %v624_v38  ;;  %v770_v22 = vsel %vm736_vm2, %v2287_v62, 0.0  ;;  %v771_v60 = vsel %vm736_vm2, %v2313_v45, 0.0  ;;  %v772_v16 = vsel %vm736_vm2, %v2321_v2, 0.0 }
 0x12b   :  { %3451 = vst [vmem:[#allocation21_spill] sm:$0xff] %v2291_v5  ;;  %v751_v26 = vsel %vm736_vm2, %v2291_v5, 0.0  ;;  %1547 = vpow2.f32 %v1361_v8  ;;  %v808_v47 = vmul.f32 %v770_v22, %v770_v22  ;;  %v1538_v31 = vpop.eup %1537  ;;  %v1363_v8 = vmul.f32 -1.442695, %v2111_v52 }
 0x12c   :  { %1549 = vpow2.f32 %v1342_v21  ;;  %v1540_v58 = vpop.eup %1539  ;;  %v809_v55 = vmul.f32 %v771_v60, %v771_v60  ;;  %v753_v21 = vsel %vm736_vm2, %v2325_v23, 0.0  ;;  %v630_v60 = vmul.f32 1.442695, %v2111_v52 }
 0x12d   :  { %v2254_v25 = vpop.f32.mrb[36].mxu0  ;;  %1551 = vpow2.f32 %v586_v17  ;;  %v913_v49 = vsel %vm813_vm3, %v808_v47, 0.0  ;;  %v1542_v38 = vpop.eup %1541 }
 0x12e   :  { %v1485_v57 = vpop.f32.mrb[37].mxu0  ;;  %1553 = vpow2.f32 %v626_v15  ;;  %914 = vadd.xlane.f32.xlu1 %v913_v49  ;;  %v490_v15 = vadd.f32 1.0, %v1540_v58  ;;  %v916_v22 = vsel %vm813_vm3, %v809_v55, 0.0  ;;  %v471_v47 = vadd.f32 1.0, %v1542_v38 }
 0x12f   :  { %v2263_v40 = vpop.f32.mrb[38].mxu0  ;;  %v789_v57 = vmul.f32 %v751_v26, %v751_v26  ;;  %1555 = vpow2.f32 %v1343_v29  ;;  %v2356_v58 = vadd.f32 %v2059_v1, %v2254_v25  ;;  %v1345_v55 = vmul.f32 -1.442695, %v2127_v7 }
 0x130   :  { %v1486_v44 = vpop.f32.mrb[39].mxu0  ;;  %1557 = vpow2.f32 %v588_v36  ;;  %v2368_v25 = vadd.f32 %v2059_v1, %v2232_v56 }
 0x131   :  { %v2309_v44 = vadd.f32 %v2059_v1, %v2208_v33  ;;  %v856_v50 = vsel %vm813_vm3, %v789_v57, 0.0  ;;  %v470_v33 = vadd.f32 1.0, %v1538_v31  ;;  %1559 = vpow2.f32 %v1362_v37  ;;  %3453 = vst [vmem:[#allocation23_spill] sm:$0xff] %v2356_v58 }
 0x132   :  { %857 = vadd.xlane.f32.xlu0 %v856_v50  ;;  %1561 = vpow2.f32 %v590_v0  ;;  %v810_v57 = vmul.f32 %v772_v16, %v772_v16  ;;  %v791_v31 = vmul.f32 %v753_v21, %v753_v21  ;;  %v1344_v37 = vmul.f32 -1.442695, %v2115_v54  ;;  %3454 = vst [vmem:[#allocation24_spill] sm:$0xff] %v2368_v25 }
 0x133   :  { %v752_v28 = vsel %vm736_vm2, %v2309_v44, 0.0  ;;  %v2341_v17 = vpop.eup %1543  ;;  %1563 = vrcp.f32 %v470_v33  ;;  %v2350_v50 = vadd.f32 %v2059_v1, %v2235_v43  ;;  %v2372_v16 = vadd.f32 %v2059_v1, %v2263_v40 }
 0x134   :  { %v790_v11 = vmul.f32 %v752_v28, %v752_v28  ;;  %v2345_v29 = vpop.eup %1545  ;;  %1565 = vpow2.f32 %v628_v59  ;;  %v919_v0 = vsel %vm813_vm3, %v810_v57, 0.0  ;;  %v862_v33 = vsel %vm813_vm3, %v791_v31, 0.0 }
 0x135   :  { %v1548_v36 = vpop.eup %1547  ;;  %1567 = vpow2.f32 %v1363_v8  ;;  %3452 = vst [vmem:[#allocation22_spill] sm:$0xff] %v2350_v50  ;;  %3455 = vst [vmem:[#allocation25_spill] sm:$0xff] %v2372_v16  ;;  %v754_v21 = vsel %vm736_vm2, %v2350_v50, 0.0  ;;  %v1364_v57 = vmul.f32 -1.442695, %v2121_v61  ;;  %v2388_v31 = vadd.f32 %v2059_v1, %v2243_v6 }
 0x136   :  { %v859_v26 = vsel %vm813_vm3, %v790_v11, 0.0  ;;  %917 = vadd.xlane.f32.xlu0 %v916_v22  ;;  %v1550_v49 = vpop.eup %1549  ;;  %1569 = vrcp.f32 %v490_v15  ;;  %v491_v38 = vadd.f32 1.0, %v1548_v36  ;;  %v755_v15 = vsel %vm736_vm2, %v2356_v58, 0.0 }
 0x137   :  { %860 = vadd.xlane.f32.xlu1 %v859_v26  ;;  %v2358_v59 = vpop.eup %1551  ;;  %1571 = vrcp.f32 %v471_v47  ;;  %v472_v8 = vadd.f32 1.0, %v1550_v49  ;;  %v592_v26 = vmul.f32 1.442695, %v2115_v54  ;;  %3456 = vst [vmem:[#allocation26_spill] sm:$0xff] %v2388_v31  ;;  %v792_v36 = vmul.f32 %v754_v21, %v754_v21 }
 0x138   :  { %v2361_v28 = vpop.eup %1553  ;;  %1573 = vpow2.f32 %v1344_v37  ;;  %v793_v37 = vmul.f32 %v755_v15, %v755_v15 }
 0x139   :  { %v1556_v43 = vpop.eup %1555  ;;  %1575 = vpow2.f32 %v630_v60  ;;  %v773_v60 = vsel %vm736_vm2, %v2368_v25, 0.0  ;;  %v865_v1 = vsel %vm813_vm3, %v792_v36, 0.0 }
 0x13a   :  { %863 = vadd.xlane.f32.xlu0 %v862_v33  ;;  %v2364_v11 = vpop.eup %1557  ;;  %1577 = vrcp.f32 %v491_v38  ;;  %v473_v56 = vadd.f32 1.0, %v1556_v43  ;;  %v756_v33 = vsel %vm736_vm2, %v2372_v16, 0.0  ;;  %v594_v43 = vmul.f32 1.442695, %v2127_v7 }
 0x13b   :  { %920 = vadd.xlane.f32.xlu1 %v919_v0  ;;  %v1560_v22 = vpop.eup %1559  ;;  %1579 = vrcp.f32 %v472_v8  ;;  %v868_v6 = vsel %vm813_vm3, %v793_v37, 0.0  ;;  %v1365_v8 = vmul.f32 -1.442695, %v2131_v12  ;;  %v811_v21 = vmul.f32 %v773_v60, %v773_v60 }
 0x13c   :  { %v2381_v47 = vpop.eup %1561  ;;  %v492_v0 = vadd.f32 1.0, %v1560_v22  ;;  %1581 = vpow2.f32 %v1345_v55  ;;  %v794_v55 = vmul.f32 %v756_v33, %v756_v33  ;;  %v632_v22 = vmul.f32 1.442695, %v2121_v61 }
 0x13d   :  { %v2384_v40 = vpop.eup %1563  ;;  %1583 = vpow2.f32 %v592_v26  ;;  %v774_v26 = vsel %vm736_vm2, %v2388_v31, 0.0  ;;  %v922_v37 = vsel %vm813_vm3, %v811_v21, 0.0  ;;  %v596_v21 = vmul.f32 1.442695, %v2142_v24 }
 0x13e   :  { %v2390_v49 = vpop.eup %1565  ;;  %1585 = vrcp.f32 %v473_v56  ;;  %869 = vadd.xlane.f32.xlu0 %v868_v6  ;;  %v1346_v56 = vmul.f32 -1.442695, %v2142_v24  ;;  %v871_v36 = vsel %vm813_vm3, %v794_v55, 0.0 }
 0x13f   :  { %v1568_v38 = vpop.eup %1567  ;;  %866 = vadd.xlane.f32.xlu1 %v865_v1  ;;  %1587 = vpow2.f32 %v1364_v57  ;;  %v812_v1 = vmul.f32 %v774_v26, %v774_v26  ;;  %v634_v57 = vmul.f32 1.442695, %v2131_v12 }
 0x140   :  { %v2402_v15 = vpop.eup %1569  ;;  %1589 = vrcp.f32 %v492_v0  ;;  %v493_v60 = vadd.f32 1.0, %v1568_v38  ;;  %v1347_v0 = vmul.f32 -1.442695, %v2156_v39  ;;  %v1366_v38 = vmul.f32 -1.442695, %v2149_v34 }
 0x141   :  { %v2408_v16 = vpop.eup %1571  ;;  %1591 = vpow2.f32 %v594_v43  ;;  %v925_v43 = vsel %vm813_vm3, %v812_v1, 0.0  ;;  %v1348_v1 = vmul.f32 -1.442695, %v2171_v53 }
 0x142   :  { %v1574_v33 = vpop.eup %1573  ;;  %1593 = vpow2.f32 %v1365_v8  ;;  %923 = vadd.xlane.f32.xlu0 %v922_v37 }
 0x143   :  { %872 = vadd.xlane.f32.xlu1 %v871_v36  ;;  %v2414_v6 = vpop.eup %1575  ;;  %1595 = vpow2.f32 %v632_v22  ;;  %v474_v25 = vadd.f32 1.0, %v1574_v33  ;;  %v598_v22 = vmul.f32 1.442695, %v2156_v39 }
 0x144   :  { %v2417_v31 = vpop.eup %1577  ;;  %1597 = vpow2.f32 %v1346_v56  ;;  %v1367_v56 = vmul.f32 -1.442695, %v2168_v51 }
 0x145   :  { %v2419_v55 = vpop.eup %1579  ;;  %1599 = vrcp.f32 %v493_v60 }
 0x146   :  { %v1582_v8 = vpop.eup %1581  ;;  %1601 = vpow2.f32 %v634_v57 }
 0x147   :  { %926 = vadd.xlane.f32.xlu1 %v925_v43  ;;  %v2424_v26 = vpop.eup %1583  ;;  %1603 = vpow2.f32 %v1347_v0  ;;  %v475_v33 = vadd.f32 1.0, %v1582_v8  ;;  %v636_v0 = vmul.f32 1.442695, %v2149_v34 }
 0x148   :  { %v2427_v36 = vpop.eup %1585  ;;  %1605 = vrcp.f32 %v474_v25  ;;  %v1349_v25 = vmul.f32 -1.442695, %v2186_v13 }
 0x149   :  { %v1588_v37 = vpop.eup %1587  ;;  %1607 = vpow2.f32 %v1366_v38  ;;  %v638_v38 = vmul.f32 1.442695, %v2168_v51 }
 0x14a   :  { %v2430_v60 = vpop.eup %1589  ;;  %1609 = vpow2.f32 %v596_v21  ;;  %v494_v58 = vadd.f32 1.0, %v1588_v37 }
 0x14b   :  { %v2433_v57 = vpop.eup %1591  ;;  %1611 = vpow2.f32 %v598_v22  ;;  %v1368_v22 = vmul.f32 -1.442695, %v2189_v14 }
 0x14c   :  { %v1594_v43 = vpop.eup %1593  ;;  %1613 = vpow2.f32 %v1367_v56 }
 0x14d   :  { %v2436_v39 = vpop.eup %1595  ;;  %1615 = vrcp.f32 %v475_v33  ;;  %v495_v24 = vadd.f32 1.0, %v1594_v43  ;;  %v600_v33 = vmul.f32 1.442695, %v2171_v53  ;;  %v1350_v53 = vmul.f32 -1.442695, %v2213_v35 }
 0x14e   :  { %v1598_v8 = vpop.eup %1597  ;;  %1617 = vpow2.f32 %v1348_v1  ;;  %v1369_v1 = vmul.f32 -1.442695, %v2196_v20 }
 0x14f   :  { %v2440_v21 = vpop.eup %1599  ;;  %1619 = vpow2.f32 %v636_v0  ;;  %v476_v56 = vadd.f32 1.0, %v1598_v8 }
 0x150   :  { %v2442_v50 = vpop.eup %1601  ;;  %1621 = vrcp.f32 %v494_v58  ;;  %v602_v58 = vmul.f32 1.442695, %v2186_v13 }
 0x151   :  { %v1604_v37 = vpop.eup %1603  ;;  %1623 = vpow2.f32 %v1349_v25 }
 0x152   :  { %v2445_v34 = vpop.eup %1605  ;;  %1625 = vpow2.f32 %v638_v38  ;;  %v477_v0 = vadd.f32 1.0, %v1604_v37  ;;  %v640_v38 = vmul.f32 1.442695, %v2189_v14 }
 0x153   :  { %v1608_v12 = vpop.eup %1607  ;;  %1627 = vrcp.f32 %v495_v24 }
 0x154   :  { %v2449_v51 = vpop.eup %1609  ;;  %1629 = vpow2.f32 %v1368_v22  ;;  %v496_v25 = vadd.f32 1.0, %v1608_v12  ;;  %v680_v12 = vmax.f32 %v2345_v29, 0.0 }
 0x155   :  { %v2451_v43 = vpop.eup %1611  ;;  %1631 = vrcp.f32 %v476_v56  ;;  %v660_v56 = vmax.f32 %v2341_v17, 0.0  ;;  %v604_v17 = vmul.f32 1.442695, %v2213_v35 }
 0x156   :  { %v1614_v8 = vpop.eup %1613  ;;  %1633 = vpow2.f32 %v600_v33  ;;  %v642_v33 = vmul.f32 1.442695, %v2196_v20 }
 0x157   :  { %v2454_v7 = vpop.eup %1615  ;;  %1635 = vpow2.f32 %v1369_v1  ;;  %v497_v22 = vadd.f32 1.0, %v1614_v8  ;;  %v661_v1 = vmax.f32 %v2358_v59, 0.0  ;;  %v1351_v8 = vmul.f32 -1.442695, %v2221_v46 }
 0x158   :  { %3457 = vst [vmem:[#allocation27_spill] sm:$0xff] %v2454_v7  ;;  %v1618_v24 = vpop.eup %1617  ;;  %1637 = vrcp.f32 %v477_v0  ;;  %v2472_v29 = vmin.f32 %v660_v56, 0.2  ;;  %v663_v56 = vmax.f32 %v2381_v47, 0.0 }
 0x159   :  { %v2458_v61 = vpop.eup %1619  ;;  %1639 = vpow2.f32 %v602_v58  ;;  %v478_v14 = vadd.f32 1.0, %v1618_v24  ;;  %v606_v24 = vmul.f32 1.442695, %v2221_v46  ;;  %v665_v46 = vmax.f32 %v2433_v57, 0.0 }
 0x15a   :  { %v2460_v37 = vpop.eup %1621  ;;  %1641 = vrcp.f32 %v496_v25  ;;  %v2474_v25 = vmin.f32 %v680_v12, 0.2  ;;  %v1370_v12 = vmul.f32 -1.442695, %v2224_v48  ;;  %v2505_v57 = vmin.f32 %v663_v56, 0.2 }
 0x15b   :  { %v1624_v13 = vpop.eup %1623  ;;  %1643 = vpow2.f32 %v640_v38  ;;  %v2478_v38 = vmin.f32 %v661_v1, 0.2  ;;  %v683_v1 = vmax.f32 %v2414_v6, 0.0  ;;  %v666_v56 = vmax.f32 %v2449_v51, 0.0 }
 0x15c   :  { %v2466_v0 = vpop.eup %1625  ;;  %1645 = vpow2.f32 %v1350_v53  ;;  %v479_v20 = vadd.f32 1.0, %v1624_v13  ;;  %v681_v53 = vmax.f32 %v2361_v28, 0.0 }
 0x15d   :  { %v2469_v58 = vpop.eup %1627  ;;  %1647 = vrcp.f32 %v497_v22  ;;  %v662_v22 = vmax.f32 %v2364_v11, 0.0  ;;  %v644_v11 = vmul.f32 1.442695, %v2224_v48 }
 0x15e   :  { %3458 = vst [vmem:[#allocation28_spill] sm:$0xff] %v2469_v58  ;;  %v1630_v7 = vpop.eup %1629  ;;  %1649 = vpow2.f32 %v642_v33  ;;  %v682_v33 = vmax.f32 %v2390_v49, 0.0  ;;  %v1371_v49 = vmul.f32 -1.442695, %v2247_v18 }
 0x15f   :  { %v2476_v59 = vpop.eup %1631  ;;  %1651 = vrcp.f32 %v478_v14  ;;  %v498_v35 = vadd.f32 1.0, %v1630_v7  ;;  %v664_v14 = vmax.f32 %v2424_v26, 0.0  ;;  %v2502_v6 = vmin.f32 %v662_v22, 0.2 }
 0x160   :  { %3459 = vst [vmem:[#allocation29_spill] sm:$0xff] %v2476_v59  ;;  %v2482_v58 = vpop.eup %1633  ;;  %1653 = vpow2.f32 %v1351_v8  ;;  %v2496_v8 = vmin.f32 %v681_v53, 0.2  ;;  %v684_v59 = vmax.f32 %v2436_v39, 0.0  ;;  %v685_v26 = vmax.f32 %v2442_v50, 0.0 }
 0x161   :  { %v1636_v13 = vpop.eup %1635  ;;  %1655 = vpow2.f32 %v604_v17  ;;  %v2507_v48 = vmin.f32 %v682_v33, 0.2  ;;  %v646_v53 = vmul.f32 1.442695, %v2247_v18 }
 0x162   :  { %v2489_v28 = vpop.eup %1637  ;;  %1657 = vrcp.f32 %v479_v20  ;;  %v499_v17 = vadd.f32 1.0, %v1636_v13  ;;  %v2518_v50 = vmin.f32 %v684_v59, 0.2  ;;  %v2522_v33 = vmin.f32 %v685_v26, 0.2 }
 0x163   :  { %3460 = vst [vmem:[#allocation30_spill] sm:$0xff] %v2489_v28  ;;  %v2494_v47 = vpop.eup %1639  ;;  %1659 = vpow2.f32 %v606_v24  ;;  %v2510_v24 = vmin.f32 %v683_v1, 0.2  ;;  %v2512_v28 = vmin.f32 %v664_v14, 0.2  ;;  %v667_v1 = vmax.f32 %v2451_v43, 0.0 }
 0x164   :  { %v2500_v7 = vpop.eup %1641  ;;  %1661 = vpow2.f32 %v1370_v12  ;;  %v1352_v12 = vmul.f32 -1.442695, %v2250_v19  ;;  %3464 = vst [vmem:[#allocation34_spill] sm:$0xff] %v2522_v33  ;;  %v687_v59 = vmax.f32 %v2466_v0, 0.0  ;;  %v2531_v43 = vmin.f32 %v666_v56, 0.2 }
 0x165   :  { %3461 = vst [vmem:[#allocation31_spill] sm:$0xff] %v2500_v7  ;;  %v1644_v20 = vpop.eup %1643  ;;  %1663 = vrcp.f32 %v498_v35  ;;  %v2514_v7 = vmin.f32 %v665_v46, 0.2  ;;  %v2536_v0 = vmin.f32 %v667_v1, 0.2 }
 0x166   :  { %v1646_v39 = vpop.eup %1645  ;;  %1665 = vpow2.f32 %v644_v11  ;;  %v686_v11 = vmax.f32 %v2458_v61, 0.0 }
 0x167   :  { %3462 = vst [vmem:[#allocation32_spill] sm:$0xff] %v2514_v7  ;;  %v2516_v22 = vpop.eup %1647  ;;  %1667 = vpow2.f32 %v1371_v49  ;;  %v480_v18 = vadd.f32 1.0, %v1646_v39  ;;  %v669_v7 = vmax.f32 %v2494_v47, 0.0 }
 0x168   :  { %3463 = vst [vmem:[#allocation33_spill] sm:$0xff] %v2516_v22  ;;  %v1650_v13 = vpop.eup %1649  ;;  %1669 = vrcp.f32 %v499_v17  ;;  %v668_v22 = vmax.f32 %v2482_v58, 0.0  ;;  %v688_v17 = vmax.f32 %v1644_v20, 0.0  ;;  %v2540_v39 = vmin.f32 %v686_v11, 0.2 }
 0x169   :  { %v2525_v46 = vpop.eup %1651  ;;  %1671 = vpow2.f32 %v646_v53  ;;  %v1353_v53 = vmul.f32 -1.442695, %v2267_v41  ;;  %v689_v56 = vmax.f32 %v1650_v13, 0.0  ;;  %v2547_v1 = vmin.f32 %v669_v7, 0.2 }
 0x16a   :  { %3465 = vst [vmem:[#allocation35_spill] sm:$0xff] %v2525_v46  ;;  %v1654_v49 = vpop.eup %1653  ;;  %v648_v7 = vmul.f32 1.442695, %v2271_v42 }
 0x16b   :  { %v1656_v33 = vpop.eup %1655  ;;  %v481_v20 = vadd.f32 1.0, %v1654_v49  ;;  %3469 = vst [vmem:[#allocation39_spill] sm:$0xff] %v2547_v1 }
 0x16c   :  { %v2534_v46 = vpop.eup %1657  ;;  %v670_v11 = vmax.f32 %v1656_v33, 0.0  ;;  %v1373_v33 = vmul.f32 -1.442695, %v2287_v62 }
 0x16d   :  { %3466 = vst [vmem:[#allocation36_spill] sm:$0xff] %v2534_v46  ;;  %v1660_v47 = vpop.eup %1659 }
 0x179   :  { %v816_v35 = vpop.xlane.xlu0 %815 }
 0x17a   :  { %v928_v14 = vmax.f32 %v816_v35, 1e-24  ;;  %v608_v35 = vmul.f32 1.442695, %v2250_v19 }
 0x17b   :  { %v879_v51 = vpop.xlane.xlu1 %878 }
 0x17c   :  { %1673 = vrsqrt.f32 %v928_v14  ;;  %v949_v26 = vmax.f32 %v879_v51, 1e-24  ;;  %v2543_v14 = vmin.f32 %v687_v59, 0.2  ;;  %v2545_v51 = vmin.f32 %v668_v22, 0.2 }
 0x17d   :  { %1675 = vpow2.f32 %v1352_v12  ;;  %v876_v61 = vpop.xlane.xlu0 %875  ;;  %v1662_v12 = vpop.eup %1661  ;;  %v1372_v22 = vmul.f32 -1.442695, %v2271_v42 }
 0x17e   :  { %1677 = vrsqrt.f32 %v949_v26  ;;  %v948_v58 = vmax.f32 %v876_v61, 1e-24  ;;  %3467 = vst [vmem:[#allocation37_spill] sm:$0xff] %v2543_v14  ;;  %3468 = vst [vmem:[#allocation38_spill] sm:$0xff] %v2545_v51  ;;  %v2550_v26 = vpop.eup %1663  ;;  %v2552_v61 = vmin.f32 %v688_v17, 0.2 }
 0x17f   :  { %1679 = vrcp.f32 %v480_v18  ;;  %3470 = vst [vmem:[#allocation40_spill] sm:$0xff] %v2550_v26  ;;  %v610_v18 = vmul.f32 1.442695, %v2267_v41  ;;  %v1666_v59 = vpop.eup %1665  ;;  %v671_v17 = vmax.f32 %v1660_v47, 0.0  ;;  %v2564_v41 = vmul.f32 1.442695, %v2287_v62 }
 0x180   :  { %1681 = vrsqrt.f32 %v948_v58  ;;  %3471 = vst [vmem:[#allocation41_spill] sm:$0xff] %v2552_v61  ;;  %v1668_v19 = vpop.eup %1667  ;;  %v2558_v58 = vmin.f32 %v689_v56, 0.2  ;;  %v500_v56 = vadd.f32 1.0, %v1662_v12  ;;  %v2572_v47 = vmul.f32 -1.442695, %v2291_v5 }
 0x181   :  { %1683 = vpow2.f32 %v608_v35  ;;  %v819_v13 = vpop.xlane.xlu0 %818  ;;  %v822_v35 = vpop.xlane.xlu1 %821  ;;  %v1399_v62 = vadd.f32 -0.5, %v2417_v31  ;;  %v1398_v14 = vadd.f32 -0.5, %v2402_v15 }
 0x182   :  { %1685 = vpow2.f32 %v1353_v53  ;;  %v929_v49 = vmax.f32 %v819_v13, 1e-24  ;;  %3472 = vst [vmem:[#allocation42_spill] sm:$0xff] %v2558_v58  ;;  %v2561_v1 = vpop.eup %1669  ;;  %v1378_v53 = vadd.f32 -0.5, %v2384_v40  ;;  %v930_v61 = vmax.f32 %v822_v35, 1e-24 }
 0x183   :  { %1687 = vrcp.f32 %v481_v20  ;;  %3473 = vst [vmem:[#allocation43_spill] sm:$0xff] %v2561_v1  ;;  %v2567_v51 = vpop.eup %1671  ;;  %v2569_v13 = vmin.f32 %v670_v11, 0.2  ;;  %v2575_v58 = vmul.f32 1.442695, %v2291_v5 }
 0x184   :  { %1689 = vrsqrt.f32 %v929_v49  ;;  %v2578_v35 = vmin.f32 %v671_v17, 0.2  ;;  %v2581_v11 = vmul.f32 -1.442695, %v2309_v44  ;;  %v1083_v46 = vmul.f32 0.0375, %v1378_v53 }
 0x185   :  { %3474 = vst [vmem:[#allocation44_spill] sm:$0xff] %v2569_v13  ;;  %1691 = vpow2.f32 %v610_v18  ;;  %v882_v20 = vpop.xlane.xlu0 %881  ;;  %v825_v18 = vpop.xlane.xlu1 %824  ;;  %v1104_v53 = vmul.f32 0.0375, %v1399_v62 }
 0x186   :  { %v1674_v42 = vpop.eup %1673  ;;  %1693 = vrsqrt.f32 %v930_v61  ;;  %v950_v1 = vmax.f32 %v882_v20, 1e-24  ;;  %v931_v5 = vmax.f32 %v825_v18, 1e-24  ;;  %v690_v61 = vmax.f32 %v1666_v59, 0.0 }
 0x187   :  { %v1676_v49 = vpop.eup %1675  ;;  %1695 = vpow2.f32 %v1372_v22  ;;  %v1004_v12 = vmul.f32 %v1674_v42, %v2062_v3  ;;  %v2592_v3 = vmul.f32 1.442695, %v2309_v44  ;;  %v501_v18 = vadd.f32 1.0, %v1668_v19 }
 0x188   :  { %v1678_v13 = vpop.eup %1677  ;;  %1697 = vrsqrt.f32 %v950_v1  ;;  %v1103_v19 = vmul.f32 0.0375, %v1398_v14 }
 0x189   :  { %v2585_v26 = vpop.eup %1679  ;;  %1699 = vrcp.f32 %v500_v56  ;;  %v1122_v22 = vsel %vm1121_vm4, %v2384_v40, %v1004_v12  ;;  %v1025_v17 = vmul.f32 %v1678_v13, %v2072_v10 }
 0x18a   :  { %v1682_v20 = vpop.eup %1681  ;;  %v1160_v42 = vsel %vm1044_vm5, %v1083_v46, %v1122_v22  ;;  %1701 = vrsqrt.f32 %v931_v5  ;;  %v1379_v46 = vadd.f32 -0.5, %v2408_v16  ;;  %v1380_v22 = vadd.f32 -0.5, %v2419_v55 }
 0x18b   :  { %v2596_v1 = vpop.eup %1683  ;;  %v1198_v59 = vsel %vm1043_vm6, %v2472_v29, %v1160_v42  ;;  %v1143_v10 = vsel %vm1121_vm4, %v2417_v31, %v1025_v17  ;;  %v1024_v13 = vmul.f32 %v1682_v20, %v2065_v4  ;;  %v2615_v29 = vmin.f32 %v690_v61, 0.2  ;;  %v885_v20 = vpop.xlane.xlu1 %884 }
 0x18c   :  { %v2605_v56 = vpop.eup %1685  ;;  %v1236_v62 = vsel %vm1042_vm7, %v2384_v40, %v1198_v59  ;;  %v1181_v5 = vsel %vm1044_vm5, %v1104_v53, %v1143_v10  ;;  %1703 = vpow2.f32 %v648_v7  ;;  %v1400_v59 = vadd.f32 -0.5, %v2430_v60 }
 0x18d   :  { %v2613_v12 = vpop.eup %1687  ;;  %1274 = vst.msk [vmem:[%s3391_s3] sm:$0xff] %vm813_vm3, %v1236_v62  ;;  %v1219_v4 = vsel %vm1043_vm6, %v2496_v8, %v1181_v5  ;;  %v1142_v40 = vsel %vm1121_vm4, %v2402_v15, %v1024_v13  ;;  %1705 = vpow2.f32 %v1373_v33  ;;  %v691_v8 = vmax.f32 %v2567_v51, 0.0  ;;  %v828_v5 = vpop.xlane.xlu0 %827 }
 0x18e   :  { %v1690_v14 = vpop.eup %1689  ;;  %v1257_v61 = vsel %vm1042_vm7, %v2417_v31, %v1219_v4  ;;  %v1180_v7 = vsel %vm1044_vm5, %v1103_v19, %v1142_v40  ;;  %1707 = vrcp.f32 %v501_v18  ;;  %v1084_v18 = vmul.f32 0.0375, %v1379_v46 }
 0x18f   :  { %v2633_v17 = vpop.eup %1691  ;;  %1295 = vst.msk [vmem:[%s3391_s3 + $0xa8] sm:$0xff] %vm813_vm3, %v1257_v61  ;;  %v1218_v33 = vsel %vm1043_vm6, %v2474_v25, %v1180_v7  ;;  %v1005_v31 = vmul.f32 %v1690_v14, %v2069_v9  ;;  %v951_v10 = vmax.f32 %v885_v20, 1e-24  ;;  %v482_v62 = vadd.f32 1.0, %v1676_v49 }
 0x190   :  { %v1694_v42 = vpop.eup %1693  ;;  %v1256_v53 = vsel %vm1042_vm7, %v2402_v15, %v1218_v33  ;;  %v1381_v15 = vadd.f32 -0.5, %v2427_v36  ;;  %v1085_v4 = vmul.f32 0.0375, %v1380_v22  ;;  %v932_v49 = vmax.f32 %v828_v5, 1e-24 }
 0x191   :  { %v2648_v13 = vpop.eup %1695  ;;  %1294 = vst.msk [vmem:[%s3391_s3 + $0xa0] sm:$0xff] %vm813_vm3, %v1256_v53  ;;  %v1123_v9 = vsel %vm1121_vm4, %v2408_v16, %v1005_v31  ;;  %v1006_v25 = vmul.f32 %v1694_v42, %v2090_v27  ;;  %1709 = vrsqrt.f32 %v951_v10  ;;  %v1105_v31 = vmul.f32 0.0375, %v1400_v59 }
 0x192   :  { %v1698_v19 = vpop.eup %1697  ;;  %v1161_v46 = vsel %vm1044_vm5, %v1084_v18, %v1123_v9  ;;  %1711 = vpow2.f32 %v2564_v41  ;;  %v1086_v42 = vmul.f32 0.0375, %v1381_v15  ;;  %v831_v18 = vpop.xlane.xlu1 %830  ;;  %v483_v9 = vadd.f32 1.0, %v2605_v56 }
 0x193   :  { %v2661_v40 = vpop.eup %1699  ;;  %v1199_v14 = vsel %vm1043_vm6, %v2478_v38, %v1161_v46  ;;  %v1124_v27 = vsel %vm1121_vm4, %v2419_v55, %v1006_v25  ;;  %v1026_v61 = vmul.f32 %v1698_v19, %v2096_v32  ;;  %1713 = vrsqrt.f32 %v932_v49  ;;  %v888_v38 = vpop.xlane.xlu0 %887 }
 0x194   :  { %v1702_v7 = vpop.eup %1701  ;;  %v1237_v22 = vsel %vm1042_vm7, %v2408_v16, %v1199_v14  ;;  %v1162_v33 = vsel %vm1044_vm5, %v1085_v4, %v1124_v27  ;;  %1715 = vpow2.f32 %v2572_v47  ;;  %v952_v53 = vmax.f32 %v888_v38, 1e-24 }
 0x195   :  { %1275 = vst.msk [vmem:[%s3391_s3 + $0x8] sm:$0xff] %vm813_vm3, %v1237_v22  ;;  %v1200_v32 = vsel %vm1043_vm6, %v2502_v6, %v1162_v33  ;;  %v1144_v41 = vsel %vm1121_vm4, %v2430_v60, %v1026_v61  ;;  %v1007_v16 = vmul.f32 %v1702_v7, %v2093_v30  ;;  %1717 = vrcp.f32 %v482_v62 }
 0x196   :  { %v1238_v47 = vsel %vm1042_vm7, %v2419_v55, %v1200_v32  ;;  %v1182_v20 = vsel %vm1044_vm5, %v1105_v31, %v1144_v41  ;;  %v2693_v59 = vpop.eup %1703  ;;  %v933_v6 = vmax.f32 %v831_v18, 1e-24  ;;  %1719 = vrsqrt.f32 %v952_v53  ;;  %v891_v46 = vpop.xlane.xlu1 %890  ;;  %v3475_v53 = vld [vmem:[#allocation27_spill] sm:$0xff] }
 0x197   :  { %1276 = vst.msk [vmem:[%s3391_s3 + $0x10] sm:$0xff] %vm813_vm3, %v1238_v47  ;;  %v1220_v30 = vsel %vm1043_vm6, %v2507_v48, %v1182_v20  ;;  %v1125_v55 = vsel %vm1121_vm4, %v2427_v36, %v1007_v16  ;;  %v1706_v10 = vpop.eup %1705  ;;  %v672_v48 = vmax.f32 %v2596_v1, 0.0  ;;  %v1374_v5 = vmul.f32 -1.442695, %v2313_v45  ;;  %v834_v7 = vpop.xlane.xlu0 %833 }
 0x198   :  { %v1258_v62 = vsel %vm1042_vm7, %v2430_v60, %v1220_v30  ;;  %v1163_v25 = vsel %vm1044_vm5, %v1086_v42, %v1125_v55  ;;  %v2711_v15 = vpop.eup %1707  ;;  %1721 = vrsqrt.f32 %v933_v6  ;;  %v652_v60 = vmul.f32 1.442695, %v2313_v45 }
 0x199   :  { %1296 = vst.msk [vmem:[%s3391_s3 + $0xb0] sm:$0xff] %vm813_vm3, %v1258_v62  ;;  %v1201_v56 = vsel %vm1043_vm6, %v2505_v57, %v1163_v25  ;;  %1723 = vpow2.f32 %v2575_v58  ;;  %v1401_v19 = vadd.f32 -0.5, %v2440_v21  ;;  %v2730_v4 = vmin.f32 %v691_v8, 0.2 }
 0x19a   :  { %v1239_v1 = vsel %vm1042_vm7, %v2427_v36, %v1201_v56  ;;  %1725 = vpow2.f32 %v2581_v11  ;;  %v1375_v57 = vmul.f32 -1.442695, %v2321_v2  ;;  %v953_v58 = vmax.f32 %v891_v46, 1e-24  ;;  %v3476_v56 = vld [vmem:[#allocation2_spill] sm:$0xff] }
 0x19b   :  { %1277 = vst.msk [vmem:[%s3391_s3 + $0x18] sm:$0xff] %vm813_vm3, %v1239_v1  ;;  %v1710_v49 = vpop.eup %1709  ;;  %1727 = vrcp.f32 %v483_v9  ;;  %v673_v36 = vmax.f32 %v2633_v17, 0.0  ;;  %v2740_v14 = vmul.f32 1.442695, %v2321_v2  ;;  %v1382_v51 = vadd.f32 -0.5, %v2445_v34  ;;  %v894_v30 = vpop.xlane.xlu0 %893 }
 0x19c   :  { %v2743_v8 = vpop.eup %1711  ;;  %v2745_v11 = vmin.f32 %v672_v48, 0.2  ;;  %v502_v27 = vadd.f32 1.0, %v2648_v13  ;;  %v1027_v61 = vmul.f32 %v1710_v49, %v2111_v52  ;;  %1729 = vrsqrt.f32 %v953_v58 }
 0x19d   :  { %v1714_v22 = vpop.eup %1713  ;;  %1731 = vpow2.f32 %v2592_v3  ;;  %v2751_v17 = vmul.f32 -1.442695, %v2325_v23  ;;  %v1106_v33 = vmul.f32 0.0375, %v1401_v19  ;;  %v934_v31 = vmax.f32 %v834_v7, 1e-24  ;;  %v837_v19 = vpop.xlane.xlu1 %836 }
 0x19e   :  { %v2753_v32 = vpop.eup %1715  ;;  %v2756_v41 = vmul.f32 1.442695, %v2325_v23  ;;  %v1145_v13 = vsel %vm1121_vm4, %v2440_v21, %v1027_v61  ;;  %v1008_v52 = vmul.f32 %v1714_v22, %v2115_v54  ;;  %v1402_v16 = vadd.f32 -0.5, %v2460_v37 }
 0x19f   :  { %v2763_v38 = vmin.f32 %v673_v36, 0.2  ;;  %v1183_v3 = vsel %vm1044_vm5, %v1106_v33, %v1145_v13  ;;  %v1087_v47 = vmul.f32 0.0375, %v1382_v51  ;;  %1733 = vrsqrt.f32 %v934_v31  ;;  %v2767_v20 = vpop.eup %1717 }
 0x1a0   :  { %1735 = vpow2.f32 %v1374_v5  ;;  %v1221_v42 = vsel %vm1043_vm6, %v2510_v24, %v1183_v3  ;;  %v1126_v54 = vsel %vm1121_vm4, %v2445_v34, %v1008_v52  ;;  %v1383_v18 = vadd.f32 -0.5, %v3475_v53  ;;  %v1720_v55 = vpop.eup %1719  ;;  %v3479_v52 = vld [vmem:[#allocation29_spill] sm:$0xff]  ;;  %v840_v3 = vpop.xlane.xlu0 %839 }
 0x1a1   :  { %1737 = vrcp.f32 %v502_v27  ;;  %v1259_v6 = vsel %vm1042_vm7, %v2440_v21, %v1221_v42  ;;  %v1164_v9 = vsel %vm1044_vm5, %v1087_v47, %v1126_v54  ;;  %v954_v62 = vmax.f32 %v894_v30, 1e-24  ;;  %v3478_v27 = vld [vmem:[#allocation28_spill] sm:$0xff] }
 0x1a2   :  { %v1722_v25 = vpop.eup %1721  ;;  %v503_v48 = vadd.f32 1.0, %v1706_v10  ;;  %1297 = vst.msk [vmem:[%s3391_s3 + $0xb8] sm:$0xff] %vm813_vm3, %v1259_v6  ;;  %v1202_v24 = vsel %vm1043_vm6, %v2512_v28, %v1164_v9  ;;  %v1107_v5 = vmul.f32 0.0375, %v1402_v16  ;;  %v1028_v1 = vmul.f32 %v1720_v55, %v3476_v56  ;;  %v3477_v10 = vld [vmem:[#allocation3_spill] sm:$0xff]  ;;  %v3480_v54 = vld [vmem:[#allocation32_spill] sm:$0xff] }
 0x1a3   :  { %v2789_v21 = vpop.eup %1723  ;;  %v1240_v46 = vsel %vm1042_vm7, %v2445_v34, %v1202_v24  ;;  %v1009_v58 = vmul.f32 %v1722_v25, %v3477_v10  ;;  %1739 = vrsqrt.f32 %v954_v62  ;;  %v935_v49 = vmax.f32 %v837_v19, 1e-24  ;;  %v3482_v62 = vld [vmem:[#allocation22_spill] sm:$0xff] }
 0x1a4   :  { %v2795_v36 = vpop.eup %1725  ;;  %1741 = vpow2.f32 %v652_v60  ;;  %1278 = vst.msk [vmem:[%s3391_s3 + $0x20] sm:$0xff] %vm813_vm3, %v1240_v46  ;;  %v1146_v28 = vsel %vm1121_vm4, %v2460_v37, %v1028_v1  ;;  %v1088_v51 = vmul.f32 0.0375, %v1383_v18  ;;  %v1403_v61 = vadd.f32 -0.5, %v3478_v27  ;;  %v3481_v18 = vld [vmem:[#allocation4_spill] sm:$0xff]  ;;  %v3483_v1 = vld [vmem:[#allocation5_spill] sm:$0xff] }
 0x1a5   :  { %v2805_v34 = vpop.eup %1727  ;;  %v692_v7 = vmax.f32 %v2693_v59, 0.0  ;;  %v1184_v22 = vsel %vm1044_vm5, %v1107_v5, %v1146_v28  ;;  %v1127_v60 = vsel %vm1121_vm4, %v3475_v53, %v1009_v58  ;;  %1743 = vrsqrt.f32 %v935_v49  ;;  %v897_v59 = vpop.xlane.xlu1 %896  ;;  %v3484_v58 = vld [vmem:[#allocation34_spill] sm:$0xff] }
 0x1a6   :  { %v1730_v33 = vpop.eup %1729  ;;  %1745 = vpow2.f32 %v1375_v57  ;;  %v1222_v31 = vsel %vm1043_vm6, %v2518_v50, %v1184_v22  ;;  %v1165_v13 = vsel %vm1044_vm5, %v1088_v51, %v1127_v60  ;;  %v1384_v16 = vadd.f32 -0.5, %v3479_v52  ;;  %v3485_v51 = vld [vmem:[#allocation31_spill] sm:$0xff] }
 0x1a7   :  { %v2819_v47 = vpop.eup %1731  ;;  %v1260_v42 = vsel %vm1042_vm7, %v2460_v37, %v1222_v31  ;;  %v1203_v57 = vsel %vm1043_vm6, %v3480_v54, %v1165_v13  ;;  %v1029_v30 = vmul.f32 %v1730_v33, %v3481_v18  ;;  %v955_v50 = vmax.f32 %v897_v59, 1e-24 }
 0x1a8   :  { %1747 = vrcp.f32 %v503_v48  ;;  %1298 = vst.msk [vmem:[%s3391_s3 + $0xc0] sm:$0xff] %vm813_vm3, %v1260_v42  ;;  %v1241_v55 = vsel %vm1042_vm7, %v3475_v53, %v1203_v57  ;;  %v1108_v6 = vmul.f32 0.0375, %v1403_v61  ;;  %v936_v9 = vmax.f32 %v840_v3, 1e-24 }
 0x1a9   :  { %v1734_v37 = vpop.eup %1733  ;;  %v2836_v25 = vmul.f32 -1.442695, %v3482_v62  ;;  %v2839_v24 = vmul.f32 1.442695, %v3482_v62  ;;  %1279 = vst.msk [vmem:[%s3391_s3 + $0x28] sm:$0xff] %vm813_vm3, %v1241_v55  ;;  %v1147_v48 = vsel %vm1121_vm4, %v3478_v27, %v1029_v30  ;;  %1749 = vrsqrt.f32 %v955_v50 }
 0x1aa   :  { %v2848_v53 = vpop.eup %1735  ;;  %v484_v5 = vadd.f32 1.0, %v2753_v32  ;;  %v1185_v56 = vsel %vm1044_vm5, %v1108_v6, %v1147_v48  ;;  %v1010_v19 = vmul.f32 %v1734_v37, %v3483_v1  ;;  %1751 = vrsqrt.f32 %v936_v9  ;;  %v3488_v6 = vld [vmem:[#allocation7_spill] sm:$0xff] }
 0x1ab   :  { %v2854_v46 = vpop.eup %1737  ;;  %v693_v10 = vmax.f32 %v2743_v8, 0.0  ;;  %v1223_v49 = vsel %vm1043_vm6, %v3484_v58, %v1185_v56  ;;  %v1089_v28 = vmul.f32 0.0375, %v1384_v16  ;;  %v1404_v61 = vadd.f32 -0.5, %v3485_v51  ;;  %v900_v8 = vpop.xlane.xlu0 %899  ;;  %v3490_v58 = vld [vmem:[#allocation35_spill] sm:$0xff] }
 0x1ac   :  { %v2861_v22 = vmin.f32 %v692_v7, 0.2  ;;  %1753 = vpow2.f32 %v2740_v14  ;;  %v1261_v32 = vsel %vm1042_vm7, %v3478_v27, %v1223_v49  ;;  %v1128_v60 = vsel %vm1121_vm4, %v3479_v52, %v1010_v19  ;;  %v3486_v7 = vld [vmem:[#allocation30_spill] sm:$0xff]  ;;  %v843_v27 = vpop.xlane.xlu1 %842 }
 0x1ad   :  { %v1740_v33 = vpop.eup %1739  ;;  %1755 = vpow2.f32 %v2751_v17  ;;  %1299 = vst.msk [vmem:[%s3391_s3 + $0xc8] sm:$0xff] %vm813_vm3, %v1261_v32  ;;  %v1166_v14 = vsel %vm1044_vm5, %v1089_v28, %v1128_v60  ;;  %v1385_v31 = vadd.f32 -0.5, %v3486_v7  ;;  %v956_v13 = vmax.f32 %v900_v8, 1e-24  ;;  %v3487_v17 = vld [vmem:[#allocation6_spill] sm:$0xff] }
 0x1ae   :  { %v2878_v16 = vpop.eup %1741  ;;  %1757 = vrcp.f32 %v484_v5  ;;  %v1204_v59 = vsel %vm1043_vm6, %v2531_v43, %v1166_v14  ;;  %v1030_v3 = vmul.f32 %v1740_v33, %v3487_v17  ;;  %v937_v42 = vmax.f32 %v843_v27, 1e-24  ;;  %v3489_v5 = vld [vmem:[#allocation33_spill] sm:$0xff]  ;;  %v3492_v14 = vld [vmem:[#allocation8_spill] sm:$0xff] }
 0x1af   :  { %v1744_v54 = vpop.eup %1743  ;;  %v2884_v57 = vmin.f32 %v693_v10, 0.2  ;;  %v1242_v18 = vsel %vm1042_vm7, %v3479_v52, %v1204_v59  ;;  %v1109_v30 = vmul.f32 0.0375, %v1404_v61  ;;  %1759 = vrsqrt.f32 %v956_v13  ;;  %v3491_v61 = vld [vmem:[#allocation23_spill] sm:$0xff]  ;;  %v846_v8 = vpop.xlane.xlu0 %845  ;;  %v3493_v17 = vld [vmem:[#allocation9_spill] sm:$0xff] }
 0x1b0   :  { %v2889_v50 = vpop.eup %1745  ;;  %v674_v55 = vmax.f32 %v2789_v21, 0.0  ;;  %1280 = vst.msk [vmem:[%s3391_s3 + $0x30] sm:$0xff] %vm813_vm3, %v1242_v18  ;;  %v1148_v43 = vsel %vm1121_vm4, %v3485_v51, %v1030_v3  ;;  %v1011_v9 = vmul.f32 %v1744_v54, %v3488_v6  ;;  %1761 = vrsqrt.f32 %v937_v42  ;;  %v903_v56 = vpop.xlane.xlu1 %902 }
 0x1b1   :  { %v485_v52 = vadd.f32 1.0, %v2795_v36  ;;  %v1186_v37 = vsel %vm1044_vm5, %v1109_v30, %v1148_v43  ;;  %v1090_v48 = vmul.f32 0.0375, %v1385_v31  ;;  %v1405_v21 = vadd.f32 -0.5, %v3489_v5  ;;  %v3494_v43 = vld [vmem:[#allocation40_spill] sm:$0xff] }
 0x1b2   :  { %v2904_v1 = vpop.eup %1747  ;;  %v1224_v19 = vsel %vm1043_vm6, %v2540_v39, %v1186_v37  ;;  %v1129_v10 = vsel %vm1121_vm4, %v3486_v7, %v1011_v9  ;;  %v1386_v49 = vadd.f32 -0.5, %v3490_v58  ;;  %v957_v36 = vmax.f32 %v903_v56, 1e-24  ;;  %v3495_v37 = vld [vmem:[#allocation24_spill] sm:$0xff] }
 0x1b3   :  { %v1750_v28 = vpop.eup %1749  ;;  %1763 = vpow2.f32 %v2756_v41  ;;  %v2915_v32 = vmul.f32 -1.442695, %v3491_v61  ;;  %v1262_v60 = vsel %vm1042_vm7, %v3485_v51, %v1224_v19  ;;  %v1167_v39 = vsel %vm1044_vm5, %v1090_v48, %v1129_v10  ;;  %v3497_v19 = vld [vmem:[#allocation36_spill] sm:$0xff] }
 0x1b4   :  { %v1752_v33 = vpop.eup %1751  ;;  %1300 = vst.msk [vmem:[%s3391_s3 + $0xd0] sm:$0xff] %vm813_vm3, %v1262_v60  ;;  %v1205_v41 = vsel %vm1043_vm6, %v2536_v0, %v1167_v39  ;;  %v1031_v31 = vmul.f32 %v1750_v28, %v3492_v14  ;;  %1765 = vrsqrt.f32 %v957_v36  ;;  %v938_v13 = vmax.f32 %v846_v8, 1e-24  ;;  %v849_v36 = vpop.xlane.xlu1 %848  ;;  %v3498_v39 = vld [vmem:[#allocation38_spill] sm:$0xff] }
 0x1b5   :  { %v2931_v51 = vmul.f32 1.442695, %v3491_v61  ;;  %v1243_v27 = vsel %vm1042_vm7, %v3486_v7, %v1205_v41  ;;  %v1110_v59 = vmul.f32 0.0375, %v1405_v21  ;;  %v1012_v3 = vmul.f32 %v1752_v33, %v3493_v17  ;;  %v3496_v21 = vld [vmem:[#allocation37_spill] sm:$0xff] }
 0x1b6   :  { %v2937_v42 = vpop.eup %1753  ;;  %v2939_v54 = vmin.f32 %v674_v55, 0.2  ;;  %1281 = vst.msk [vmem:[%s3391_s3 + $0x38] sm:$0xff] %vm813_vm3, %v1243_v27  ;;  %v1149_v0 = vsel %vm1121_vm4, %v3489_v5, %v1031_v31  ;;  %v1091_v18 = vmul.f32 0.0375, %v1386_v49  ;;  %1767 = vrsqrt.f32 %v938_v13  ;;  %v906_v49 = vpop.xlane.xlu0 %905 }
 0x1b7   :  { %v2948_v30 = vpop.eup %1755  ;;  %1769 = vpow2.f32 %v2836_v25  ;;  %v1187_v7 = vsel %vm1044_vm5, %v1110_v59, %v1149_v0  ;;  %v1130_v55 = vsel %vm1121_vm4, %v3490_v58, %v1012_v3  ;;  %v1406_v6 = vadd.f32 -0.5, %v3494_v43 }
 0x1b8   :  { %v2957_v9 = vpop.eup %1757  ;;  %v2960_v48 = vmul.f32 -1.442695, %v3495_v37  ;;  %v1225_v56 = vsel %vm1043_vm6, %v3496_v21, %v1187_v7  ;;  %v1168_v25 = vsel %vm1044_vm5, %v1091_v18, %v1130_v55  ;;  %v1387_v10 = vadd.f32 -0.5, %v3497_v19 }
 0x1b9   :  { %v1760_v28 = vpop.eup %1759  ;;  %v1263_v60 = vsel %vm1042_vm7, %v3489_v5, %v1225_v56  ;;  %v1206_v8 = vsel %vm1043_vm6, %v3498_v39, %v1168_v25  ;;  %v958_v33 = vmax.f32 %v906_v49, 1e-24  ;;  %v939_v41 = vmax.f32 %v849_v36, 1e-24  ;;  %v3499_v5 = vld [vmem:[#allocation11_spill] sm:$0xff] }
 0x1ba   :  { %v1762_v14 = vpop.eup %1761  ;;  %1771 = vrcp.f32 %v485_v52  ;;  %v675_v31 = vmax.f32 %v2819_v47, 0.0  ;;  %1301 = vst.msk [vmem:[%s3391_s3 + $0xd8] sm:$0xff] %vm813_vm3, %v1263_v60  ;;  %v1244_v13 = vsel %vm1042_vm7, %v3490_v58, %v1206_v8  ;;  %v1032_v27 = vmul.f32 %v1760_v28, %v3499_v5  ;;  %v3500_v52 = vld [vmem:[#allocation10_spill] sm:$0xff]  ;;  %v3501_v58 = vld [vmem:[#allocation43_spill] sm:$0xff]  ;;  %v852_v28 = vpop.xlane.xlu0 %851 }
 0x1bb   :  { %v2984_v59 = vmul.f32 1.442695, %v3495_v37  ;;  %1282 = vst.msk [vmem:[%s3391_s3 + $0x40] sm:$0xff] %vm813_vm3, %v1244_v13  ;;  %v1111_v47 = vmul.f32 0.0375, %v1406_v6  ;;  %v1013_v17 = vmul.f32 %v1762_v14, %v3500_v52  ;;  %1773 = vrsqrt.f32 %v958_v33  ;;  %v3503_v39 = vld [vmem:[#allocation39_spill] sm:$0xff] }
 0x1bc   :  { %v1150_v3 = vsel %vm1121_vm4, %v3494_v43, %v1032_v27  ;;  %v1092_v0 = vmul.f32 0.0375, %v1387_v10  ;;  %v1407_v18 = vadd.f32 -0.5, %v3501_v58  ;;  %1775 = vrsqrt.f32 %v939_v41  ;;  %v3502_v10 = vld [vmem:[#allocation41_spill] sm:$0xff]  ;;  %v3504_v33 = vld [vmem:[#allocation12_spill] sm:$0xff] }
 0x1bd   :  { %v2995_v7 = vpop.eup %1763  ;;  %v504_v55 = vadd.f32 1.0, %v2848_v53  ;;  %1777 = vpow2.f32 %v2839_v24  ;;  %v1188_v6 = vsel %vm1044_vm5, %v1111_v47, %v1150_v3  ;;  %v1131_v21 = vsel %vm1121_vm4, %v3497_v19, %v1013_v17  ;;  %v909_v24 = vpop.xlane.xlu1 %908  ;;  %v3505_v47 = vld [vmem:[#allocation25_spill] sm:$0xff] }
 0x1be   :  { %v1766_v56 = vpop.eup %1765  ;;  %v3004_v25 = vmin.f32 %v675_v31, 0.2  ;;  %v1226_v49 = vsel %vm1043_vm6, %v3502_v10, %v1188_v6  ;;  %v1169_v36 = vsel %vm1044_vm5, %v1092_v0, %v1131_v21  ;;  %v1388_v53 = vadd.f32 -0.5, %v2585_v26  ;;  %v3506_v17 = vld [vmem:[#allocation13_spill] sm:$0xff]  ;;  %v3507_v6 = vld [vmem:[#allocation42_spill] sm:$0xff] }
 0x1bf   :  { %v1264_v60 = vsel %vm1042_vm7, %v3494_v43, %v1226_v49  ;;  %v1207_v8 = vsel %vm1043_vm6, %v3503_v39, %v1169_v36  ;;  %v1033_v41 = vmul.f32 %v1766_v56, %v3504_v33  ;;  %v959_v14 = vmax.f32 %v909_v24, 1e-24 }
 0x1c0   :  { %v1768_v31 = vpop.eup %1767  ;;  %1779 = vpow2.f32 %v2915_v32  ;;  %1302 = vst.msk [vmem:[%s3391_s3 + $0xe0] sm:$0xff] %vm813_vm3, %v1264_v60  ;;  %v1245_v13 = vsel %vm1042_vm7, %v3497_v19, %v1207_v8  ;;  %v1112_v43 = vmul.f32 0.0375, %v1407_v18  ;;  %v940_v5 = vmax.f32 %v852_v28, 1e-24 }
 0x1c1   :  { %v3027_v27 = vpop.eup %1769  ;;  %v1359_v52 = vmul.f32 -1.442695, %v3505_v47  ;;  %1283 = vst.msk [vmem:[%s3391_s3 + $0x48] sm:$0xff] %vm813_vm3, %v1245_v13  ;;  %v1151_v32 = vsel %vm1121_vm4, %v3501_v58, %v1033_v41  ;;  %v1014_v3 = vmul.f32 %v1768_v31, %v3506_v17  ;;  %1781 = vrsqrt.f32 %v959_v14  ;;  %v855_v24 = vpop.xlane.xlu1 %854  ;;  %v3510_v13 = vld [vmem:[#allocation26_spill] sm:$0xff] }
 0x1c2   :  { %v505_v19 = vadd.f32 1.0, %v2889_v50  ;;  %v1189_v0 = vsel %vm1044_vm5, %v1112_v43, %v1151_v32  ;;  %v1093_v18 = vmul.f32 0.0375, %v1388_v53  ;;  %1783 = vrsqrt.f32 %v940_v5  ;;  %v912_v53 = vpop.xlane.xlu0 %911  ;;  %v3511_v32 = vld [vmem:[#allocation14_spill] sm:$0xff] }
 0x1c3   :  { %1785 = vrcp.f32 %v504_v55  ;;  %v1227_v21 = vsel %vm1043_vm6, %v3507_v6, %v1189_v0  ;;  %v1132_v56 = vsel %vm1121_vm4, %v2585_v26, %v1014_v3  ;;  %v1408_v10 = vadd.f32 -0.5, %v2661_v40 }
 0x1c4   :  { %v3048_v49 = vpop.eup %1771  ;;  %1787 = vpow2.f32 %v2931_v51  ;;  %v1265_v50 = vsel %vm1042_vm7, %v3501_v58, %v1227_v21  ;;  %v1170_v55 = vsel %vm1044_vm5, %v1093_v18, %v1132_v56  ;;  %v1389_v36 = vadd.f32 -0.5, %v2613_v12  ;;  %v3508_v51 = vld [vmem:[#allocation44_spill] sm:$0xff] }
 0x1c5   :  { %v1774_v28 = vpop.eup %1773  ;;  %1789 = vpow2.f32 %v2960_v48  ;;  %1303 = vst.msk [vmem:[%s3391_s3 + $0xe8] sm:$0xff] %vm813_vm3, %v1265_v50  ;;  %v1208_v60 = vsel %vm1043_vm6, %v3508_v51, %v1170_v55  ;;  %v960_v58 = vmax.f32 %v912_v53, 1e-24  ;;  %v941_v39 = vmax.f32 %v855_v24, 1e-24  ;;  %v3509_v48 = vld [vmem:[#allocation15_spill] sm:$0xff] }
 0x1c6   :  { %v1776_v8 = vpop.eup %1775  ;;  %1791 = vrcp.f32 %v505_v19  ;;  %v622_v33 = vmul.f32 1.442695, %v3505_v47  ;;  %v1246_v41 = vsel %vm1042_vm7, %v2585_v26, %v1208_v60  ;;  %v1034_v14 = vmul.f32 %v1774_v28, %v3509_v48  ;;  %v858_v50 = vpop.xlane.xlu0 %857 }
 0x1c7   :  { %v3070_v31 = vpop.eup %1777  ;;  %v1377_v43 = vmul.f32 -1.442695, %v3510_v13  ;;  %1284 = vst.msk [vmem:[%s3391_s3 + $0x50] sm:$0xff] %vm813_vm3, %v1246_v41  ;;  %v1113_v5 = vmul.f32 0.0375, %v1408_v10  ;;  %v1015_v17 = vmul.f32 %v1776_v8, %v3511_v32  ;;  %1793 = vrsqrt.f32 %v960_v58  ;;  %v915_v10 = vpop.xlane.xlu1 %914 }
 0x1c8   :  { %v486_v3 = vadd.f32 1.0, %v2948_v30  ;;  %v1152_v26 = vsel %vm1121_vm4, %v2661_v40, %v1034_v14  ;;  %v1094_v19 = vmul.f32 0.0375, %v1389_v36  ;;  %1795 = vrsqrt.f32 %v941_v39  ;;  %v3513_v39 = vld [vmem:[#allocation17_spill] sm:$0xff] }
 0x1c9   :  { %1797 = vpow2.f32 %v2984_v59  ;;  %v1190_v0 = vsel %vm1044_vm5, %v1113_v5, %v1152_v26  ;;  %v1133_v18 = vsel %vm1121_vm4, %v2613_v12, %v1015_v17  ;;  %v1409_v6 = vadd.f32 -0.5, %v2711_v15 }
 0x1ca   :  { %v3089_v21 = vpop.eup %1779  ;;  %1799 = vpow2.f32 %v1359_v52  ;;  %v1228_v30 = vsel %vm1043_vm6, %v2615_v29, %v1190_v0  ;;  %v1171_v56 = vsel %vm1044_vm5, %v1094_v19, %v1133_v18  ;;  %v1390_v59 = vadd.f32 -0.5, %v2767_v20  ;;  %v918_v0 = vpop.xlane.xlu0 %917 }
 0x1cb   :  { %v1782_v55 = vpop.eup %1781  ;;  %v1266_v36 = vsel %vm1042_vm7, %v2661_v40, %v1228_v30  ;;  %v1209_v52 = vsel %vm1043_vm6, %v2578_v35, %v1171_v56  ;;  %v961_v53 = vmax.f32 %v915_v10, 1e-24  ;;  %v942_v24 = vmax.f32 %v858_v50, 1e-24  ;;  %v3512_v40 = vld [vmem:[#allocation16_spill] sm:$0xff]  ;;  %v861_v18 = vpop.xlane.xlu1 %860 }
 0x1cc   :  { %v1784_v28 = vpop.eup %1783  ;;  %v694_v29 = vmax.f32 %v2878_v16, 0.0  ;;  %1801 = vpow2.f32 %v1377_v43  ;;  %1304 = vst.msk [vmem:[%s3391_s3 + $0xf0] sm:$0xff] %vm813_vm3, %v1266_v36  ;;  %v1247_v51 = vsel %vm1042_vm7, %v2613_v12, %v1209_v52  ;;  %v1035_v60 = vmul.f32 %v1782_v55, %v3512_v40 }
 0x1cd   :  { %v3112_v58 = vpop.eup %1785  ;;  %v3115_v35 = vmul.f32 1.442695, %v3510_v13  ;;  %1285 = vst.msk [vmem:[%s3391_s3 + $0x58] sm:$0xff] %vm813_vm3, %v1247_v51  ;;  %v1114_v16 = vmul.f32 0.0375, %v1409_v6  ;;  %v1016_v8 = vmul.f32 %v1784_v28, %v3513_v39  ;;  %1803 = vrsqrt.f32 %v961_v53  ;;  %v3515_v53 = vld [vmem:[#allocation18_spill] sm:$0xff] }
 0x1ce   :  { %v3122_v41 = vpop.eup %1787  ;;  %v487_v12 = vadd.f32 1.0, %v3027_v27  ;;  %v1153_v48 = vsel %vm1121_vm4, %v2711_v15, %v1035_v60  ;;  %v1095_v14 = vmul.f32 0.0375, %v1390_v59  ;;  %1805 = vrsqrt.f32 %v942_v24 }
 0x1cf   :  { %v1790_v43 = vpop.eup %1789  ;;  %1807 = vrcp.f32 %v486_v3  ;;  %v1191_v5 = vsel %vm1044_vm5, %v1114_v16, %v1153_v48  ;;  %v1134_v32 = vsel %vm1121_vm4, %v2767_v20, %v1016_v8  ;;  %v1410_v17 = vadd.f32 -0.5, %v2854_v46  ;;  %v921_v40 = vpop.xlane.xlu1 %920 }
 0x1d0   :  { %v3134_v26 = vpop.eup %1791  ;;  %1809 = vpow2.f32 %v622_v33  ;;  %v1229_v27 = vsel %vm1043_vm6, %v2730_v4, %v1191_v5  ;;  %v1172_v19 = vsel %vm1044_vm5, %v1095_v14, %v1134_v32  ;;  %v1391_v3 = vadd.f32 -0.5, %v2805_v34 }
 0x1d1   :  { %v1794_v6 = vpop.eup %1793  ;;  %v1267_v30 = vsel %vm1042_vm7, %v2711_v15, %v1229_v27  ;;  %v1210_v33 = vsel %vm1043_vm6, %v2745_v11, %v1172_v19  ;;  %v962_v56 = vmax.f32 %v918_v0, 1e-24  ;;  %v943_v59 = vmax.f32 %v861_v18, 1e-24  ;;  %v3514_v15 = vld [vmem:[#allocation19_spill] sm:$0xff] }
 0x1d2   :  { %v1796_v10 = vpop.eup %1795  ;;  %v3148_v4 = vmin.f32 %v694_v29, 0.2  ;;  %1811 = vrcp.f32 %v487_v12  ;;  %1305 = vst.msk [vmem:[%s3391_s3 + $0xf8] sm:$0xff] %vm813_vm3, %v1267_v30  ;;  %v1248_v50 = vsel %vm1042_vm7, %v2767_v20, %v1210_v33  ;;  %v1036_v55 = vmul.f32 %v1794_v6, %v3514_v15  ;;  %v3517_v30 = vld [vmem:[#allocation21_spill] sm:$0xff] }
 0x1d3   :  { %v3158_v36 = vpop.eup %1797  ;;  %v695_v11 = vmax.f32 %v2937_v42, 0.0  ;;  %1286 = vst.msk [vmem:[%s3391_s3 + $0x60] sm:$0xff] %vm813_vm3, %v1248_v50  ;;  %v1115_v52 = vmul.f32 0.0375, %v1410_v17  ;;  %v1017_v24 = vmul.f32 %v1796_v10, %v3515_v53  ;;  %1813 = vrsqrt.f32 %v962_v56  ;;  %v864_v42 = vpop.xlane.xlu0 %863 }
 0x1d4   :  { %v1800_v28 = vpop.eup %1799  ;;  %v1154_v20 = vsel %vm1121_vm4, %v2854_v46, %v1036_v55  ;;  %v1096_v29 = vmul.f32 0.0375, %v1391_v3  ;;  %v1411_v51 = vadd.f32 -0.5, %v2904_v1  ;;  %1815 = vrsqrt.f32 %v943_v59 }
 0x1d5   :  { %v1192_v60 = vsel %vm1044_vm5, %v1115_v52, %v1154_v20  ;;  %v1135_v16 = vsel %vm1121_vm4, %v2805_v34, %v1017_v24  ;;  %v963_v39 = vmax.f32 %v921_v40, 1e-24  ;;  %v944_v8 = vmax.f32 %v864_v42, 1e-24  ;;  %v867_v24 = vpop.xlane.xlu1 %866 }
 0x1d6   :  { %v1802_v12 = vpop.eup %1801  ;;  %v488_v48 = vadd.f32 1.0, %v3089_v21  ;;  %v1230_v14 = vsel %vm1043_vm6, %v2861_v22, %v1192_v60  ;;  %v1173_v5 = vsel %vm1044_vm5, %v1096_v29, %v1135_v16  ;;  %v1392_v32 = vadd.f32 -0.5, %v2957_v9 }
 0x1d7   :  { %v1804_v17 = vpop.eup %1803  ;;  %v506_v27 = vadd.f32 1.0, %v1790_v43  ;;  %v1268_v19 = vsel %vm1042_vm7, %v2854_v46, %v1230_v14  ;;  %v1211_v3 = vsel %vm1043_vm6, %v2763_v38, %v1173_v5  ;;  %1817 = vrsqrt.f32 %v963_v39  ;;  %v3516_v43 = vld [vmem:[#allocation20_spill] sm:$0xff] }
 0x1d8   :  { %v1806_v21 = vpop.eup %1805  ;;  %v489_v0 = vadd.f32 1.0, %v1800_v28  ;;  %1306 = vst.msk [vmem:[%s3391_s3 + $0x100] sm:$0xff] %vm813_vm3, %v1268_v19  ;;  %v1249_v22 = vsel %vm1042_vm7, %v2805_v34, %v1211_v3  ;;  %v1037_v18 = vmul.f32 %v1804_v17, %v3516_v43  ;;  %1819 = vrsqrt.f32 %v944_v8  ;;  %v870_v28 = vpop.xlane.xlu0 %869 }
 0x1d9   :  { %v3196_v46 = vpop.eup %1807  ;;  %v3198_v6 = vmin.f32 %v695_v11, 0.2  ;;  %1821 = vpow2.f32 %v3115_v35  ;;  %1287 = vst.msk [vmem:[%s3391_s3 + $0x68] sm:$0xff] %vm813_vm3, %v1249_v22  ;;  %v1116_v38 = vmul.f32 0.0375, %v1411_v51  ;;  %v1018_v33 = vmul.f32 %v1806_v21, %v3517_v30 }
 0x1da   :  { %v3206_v56 = vpop.eup %1809  ;;  %1823 = vrcp.f32 %v488_v48  ;;  %v507_v34 = vadd.f32 1.0, %v1802_v12  ;;  %v1155_v59 = vsel %vm1121_vm4, %v2904_v1, %v1037_v18  ;;  %v1097_v10 = vmul.f32 0.0375, %v1392_v32  ;;  %v873_v48 = vpop.xlane.xlu1 %872 }
 0x1db   :  { %1825 = vrcp.f32 %v506_v27  ;;  %v1193_v35 = vsel %vm1044_vm5, %v1116_v38, %v1155_v59  ;;  %v1136_v50 = vsel %vm1121_vm4, %v2957_v9, %v1018_v33  ;;  %v1412_v15 = vadd.f32 -0.5, %v3112_v58 }
 0x1dc   :  { %v3217_v55 = vpop.eup %1811  ;;  %1827 = vrcp.f32 %v489_v0  ;;  %v1231_v11 = vsel %vm1043_vm6, %v2884_v57, %v1193_v35  ;;  %v1174_v52 = vsel %vm1044_vm5, %v1097_v10, %v1136_v50  ;;  %v1393_v53 = vadd.f32 -0.5, %v3048_v49  ;;  %v924_v14 = vpop.xlane.xlu0 %923 }
 0x1dd   :  { %v1814_v20 = vpop.eup %1813  ;;  %v1269_v29 = vsel %vm1042_vm7, %v2904_v1, %v1231_v11  ;;  %v1212_v51 = vsel %vm1043_vm6, %v2939_v54, %v1174_v52  ;;  %v945_v40 = vmax.f32 %v867_v24, 1e-24  ;;  %v946_v42 = vmax.f32 %v870_v28, 1e-24 }
 0x1de   :  { %v1816_v60 = vpop.eup %1815  ;;  %1829 = vrcp.f32 %v507_v34  ;;  %1307 = vst.msk [vmem:[%s3391_s3 + $0x108] sm:$0xff] %vm813_vm3, %v1269_v29  ;;  %v1250_v57 = vsel %vm1042_vm7, %v2957_v9, %v1212_v51  ;;  %v1038_v16 = vmul.f32 %v1814_v20, %v2313_v45  ;;  %v1413_v1 = vadd.f32 -0.5, %v3134_v26 }
 0x1df   :  { %v676_v39 = vmax.f32 %v2995_v7, 0.0  ;;  %1288 = vst.msk [vmem:[%s3391_s3 + $0x70] sm:$0xff] %vm813_vm3, %v1250_v57  ;;  %v1117_v54 = vmul.f32 0.0375, %v1412_v15  ;;  %v1019_v8 = vmul.f32 %v1816_v60, %v2309_v44  ;;  %1831 = vrsqrt.f32 %v945_v40 }
 0x1e0   :  { %v1156_v12 = vsel %vm1121_vm4, %v3112_v58, %v1038_v16  ;;  %v1098_v9 = vmul.f32 0.0375, %v1393_v53  ;;  %v1394_v45 = vadd.f32 -0.5, %v3196_v46  ;;  %1833 = vrsqrt.f32 %v946_v42 }
 0x1e1   :  { %v1818_v7 = vpop.eup %1817  ;;  %v1194_v5 = vsel %vm1044_vm5, %v1117_v54, %v1156_v12  ;;  %v1137_v32 = vsel %vm1121_vm4, %v3048_v49, %v1019_v8  ;;  %v947_v44 = vmax.f32 %v873_v48, 1e-24  ;;  %v964_v17 = vmax.f32 %v924_v14, 1e-24 }
 0x1e2   :  { %v1820_v27 = vpop.eup %1819  ;;  %v1232_v19 = vsel %vm1043_vm6, %v3148_v4, %v1194_v5  ;;  %v1175_v3 = vsel %vm1044_vm5, %v1098_v9, %v1137_v32  ;;  %v1118_v21 = vmul.f32 0.0375, %v1413_v1  ;;  %v1039_v0 = vmul.f32 %v1818_v7, %v2321_v2 }
 0x1e3   :  { %v3261_v22 = vpop.eup %1821  ;;  %v1270_v43 = vsel %vm1042_vm7, %v3112_v58, %v1232_v19  ;;  %v1213_v18 = vsel %vm1043_vm6, %v3004_v25, %v1175_v3  ;;  %v1020_v38 = vmul.f32 %v1820_v27, %v2325_v23  ;;  %1835 = vrsqrt.f32 %v947_v44  ;;  %v927_v25 = vpop.xlane.xlu1 %926 }
 0x1e4   :  { %v1824_v4 = vpop.eup %1823  ;;  %1308 = vst.msk [vmem:[%s3391_s3 + $0x110] sm:$0xff] %vm813_vm3, %v1270_v43  ;;  %v1251_v2 = vsel %vm1042_vm7, %v3048_v49, %v1213_v18  ;;  %v1157_v58 = vsel %vm1121_vm4, %v3134_v26, %v1039_v0  ;;  %v1099_v30 = vmul.f32 0.0375, %v1394_v45  ;;  %1837 = vrsqrt.f32 %v964_v17 }
 0x1e5   :  { %v3280_v33 = vpop.eup %1825  ;;  %v714_v23 = vmin.f32 %v676_v39, 0.2  ;;  %1289 = vst.msk [vmem:[%s3391_s3 + $0x78] sm:$0xff] %vm813_vm3, %v1251_v2  ;;  %v1195_v34 = vsel %vm1044_vm5, %v1118_v21, %v1157_v58  ;;  %v1138_v49 = vsel %vm1121_vm4, %v3196_v46, %v1020_v38  ;;  %v965_v59 = vmax.f32 %v927_v25, 1e-24 }
 0x1e6   :  { %v1828_v10 = vpop.eup %1827  ;;  %v677_v35 = vmax.f32 %v3070_v31, 0.0  ;;  %v1233_v50 = vsel %vm1043_vm6, %v3198_v6, %v1195_v34  ;;  %v1176_v15 = vsel %vm1044_vm5, %v1099_v30, %v1138_v49  ;;  %v1395_v53 = vadd.f32 -0.5, %v3217_v55 }
 0x1e7   :  { %v1271_v11 = vsel %vm1042_vm7, %v3134_v26, %v1233_v50  ;;  %v1214_v52 = vsel %vm1043_vm6, %v714_v23, %v1176_v15  ;;  %1839 = vrsqrt.f32 %v965_v59  ;;  %v678_v31 = vmax.f32 %v3122_v41, 0.0 }
 0x1e8   :  { %v1830_v24 = vpop.eup %1829  ;;  %1309 = vst.msk [vmem:[%s3391_s3 + $0x118] sm:$0xff] %vm813_vm3, %v1271_v11  ;;  %v1252_v6 = vsel %vm1042_vm7, %v3196_v46, %v1214_v52  ;;  %v1396_v28 = vadd.f32 -0.5, %v1824_v4  ;;  %v679_v20 = vmax.f32 %v3206_v56, 0.0  ;;  %v1397_v51 = vadd.f32 -0.5, %v1828_v10 }
 0x1e9   :  { %v1832_v26 = vpop.eup %1831  ;;  %1290 = vst.msk [vmem:[%s3391_s3 + $0x80] sm:$0xff] %vm813_vm3, %v1252_v6  ;;  %v715_v40 = vmin.f32 %v677_v35, 0.2  ;;  %v1100_v42 = vmul.f32 0.0375, %v1395_v53  ;;  %v1414_v56 = vadd.f32 -0.5, %v3280_v33 }
 0x1ea   :  { %v1834_v29 = vpop.eup %1833  ;;  %v1021_v41 = vmul.f32 %v1832_v26, %v3482_v62  ;;  %v716_v57 = vmin.f32 %v678_v31, 0.2  ;;  %v1101_v16 = vmul.f32 0.0375, %v1396_v28  ;;  %v696_v39 = vmax.f32 %v3158_v36, 0.0 }
 0x1eb   :  { %v1022_v60 = vmul.f32 %v1834_v29, %v3491_v61  ;;  %v717_v54 = vmin.f32 %v679_v20, 0.2  ;;  %v1102_v48 = vmul.f32 0.0375, %v1397_v51  ;;  %v1415_v5 = vadd.f32 -0.5, %v1830_v24 }
 0x1ec   :  { %v1139_v46 = vsel %vm1121_vm4, %v3217_v55, %v1021_v41  ;;  %v697_v32 = vmax.f32 %v3261_v22, 0.0  ;;  %v734_v27 = vmin.f32 %v696_v39, 0.2 }
 0x1ed   :  { %v1836_v1 = vpop.eup %1835  ;;  %v1177_v62 = vsel %vm1044_vm5, %v1100_v42, %v1139_v46  ;;  %v1140_v8 = vsel %vm1121_vm4, %v1824_v4, %v1022_v60  ;;  %v1120_v18 = vmul.f32 0.0375, %v1415_v5 }
 0x1ee   :  { %v1838_v12 = vpop.eup %1837  ;;  %v1215_v61 = vsel %vm1043_vm6, %v715_v40, %v1177_v62  ;;  %v1178_v9 = vsel %vm1044_vm5, %v1101_v16, %v1140_v8  ;;  %v1023_v45 = vmul.f32 %v1836_v1, %v3505_v47  ;;  %v735_v38 = vmin.f32 %v697_v32, 0.2 }
 0x1ef   :  { %v1253_v36 = vsel %vm1042_vm7, %v3217_v55, %v1215_v61  ;;  %v1216_v14 = vsel %vm1043_vm6, %v716_v57, %v1178_v9  ;;  %v1040_v7 = vmul.f32 %v1838_v12, %v3495_v37  ;;  %v1119_v55 = vmul.f32 0.0375, %v1414_v56 }
 0x1f0   :  { %1291 = vst.msk [vmem:[%s3391_s3 + $0x88] sm:$0xff] %vm813_vm3, %v1253_v36  ;;  %v1254_v47 = vsel %vm1042_vm7, %v1824_v4, %v1216_v14  ;;  %v1141_v44 = vsel %vm1121_vm4, %v1828_v10, %v1023_v45 }
 0x1f1   :  { %v1840_v17 = vpop.eup %1839  ;;  %1292 = vst.msk [vmem:[%s3391_s3 + $0x90] sm:$0xff] %vm813_vm3, %v1254_v47  ;;  %v1179_v37 = vsel %vm1044_vm5, %v1102_v48, %v1141_v44  ;;  %v1158_v19 = vsel %vm1121_vm4, %v3280_v33, %v1040_v7 }
 0x1f2   :  { %v1217_v3 = vsel %vm1043_vm6, %v717_v54, %v1179_v37  ;;  %v1196_v21 = vsel %vm1044_vm5, %v1119_v55, %v1158_v19  ;;  %v1041_v0 = vmul.f32 %v1840_v17, %v3510_v13 }
 0x1f3   :  { %v1255_v22 = vsel %vm1042_vm7, %v1828_v10, %v1217_v3  ;;  %v1234_v43 = vsel %vm1043_vm6, %v734_v27, %v1196_v21 }
 0x1f4   :  { %1293 = vst.msk [vmem:[%s3391_s3 + $0x98] sm:$0xff] %vm813_vm3, %v1255_v22  ;;  %v1272_v4 = vsel %vm1042_vm7, %v3280_v33, %v1234_v43  ;;  %v1159_v13 = vsel %vm1121_vm4, %v1830_v24, %v1041_v0 }
 0x1f5   :  { %1310 = vst.msk [vmem:[%s3391_s3 + $0x120] sm:$0xff] %vm813_vm3, %v1272_v4  ;;  %v1197_v2 = vsel %vm1044_vm5, %v1120_v18, %v1159_v13 }
 0x1f6   :  { %v1235_v58 = vsel %vm1043_vm6, %v735_v38, %v1197_v2 }
 0x1f7   :  { %v1273_v30 = vsel %vm1042_vm7, %v1830_v24, %v1235_v58 }
 0x1f8   :  { %1311 = vst.msk [vmem:[%s3391_s3 + $0x128] sm:$0xff] %vm813_vm3, %v1273_v30 }

</bundles_post_ra>
